<compile_context>
chip_gen: v5e
topology: v5e:2x2
jax: 0.10.0
libtpu: 0.0.40
codegen_flags: <defaults>
</compile_context>

<pallas_src>
import functools

import jax
import jax.numpy as jnp
from jax.experimental import pallas as pl
from jax.experimental.pallas import tpu as pltpu

LN_EPS = 1e-5  # torch.nn.LayerNorm default

# LN duplication weights per parity input, per lane half (lanes<C, lanes>=C):
#   (di,hi)=(0,0): [x0 | x3(+x6 dup)] -> (1, 2)
#   (di,hi)=(1,0): [x1 | x4]          -> (1, 1)
#   (di,hi)=(0,1): [x2(+x5 dup) | - ] -> (2, 0)
#   (di,hi)=(1,1): [ -  | x7]         -> (0, 1)
_DUP = ((1.0, 2.0), (1.0, 1.0), (2.0, 0.0), (0.0, 1.0))


def _merge_ln_matmul_kernel(x00_ref, x10_ref, x01_ref, x11_ref, w_ref, b_ref,
                            o_ref, *, C, inv_k):
    """Fused 2x2x2 merge + LayerNorm(8C) + Linear(8C->2C, bias folded)."""
    K2 = 2 * C
    H2, W2, _ = o_ref.shape
    rows = H2 * W2
    lane = jax.lax.broadcasted_iota(jnp.int32, (1, K2), 1)

    # Pass 1: weighted sums for mean and E[x^2] (duplicate blocks count x2,
    # unused parity blocks count x0).
    parts = []
    s1 = jnp.zeros((rows, 1), jnp.float32)
    s2 = jnp.zeros((rows, 1), jnp.float32)
    for ref, (wlo, whi) in zip((x00_ref, x10_ref, x01_ref, x11_ref), _DUP):
        p = ref[...].reshape(rows, K2).astype(jnp.float32)
        d = jnp.where(lane < C, wlo, whi).astype(jnp.float32)
        pd = p * d
        s1 = s1 + jnp.sum(pd, axis=-1, keepdims=True)
        s2 = s2 + jnp.sum(pd * p, axis=-1, keepdims=True)
        parts.append(p)

    mean = s1 * inv_k
    var = s2 * inv_k - mean * mean
    r = jax.lax.rsqrt(var + LN_EPS)

    # Pass 2: normalize each parity block and accumulate its matmul.  Weight
    # rows for unused parity halves are zero, so no lane extraction needed.
    acc = jnp.zeros((rows, w_ref.shape[1]), jnp.float32)
    for i, p in enumerate(parts):
        xn = ((p - mean) * r).astype(w_ref.dtype)           # bf16 MXU operand
        acc = acc + jnp.dot(xn, w_ref[i * K2:(i + 1) * K2, :],
                            preferred_element_type=jnp.float32)

    out = acc + b_ref[...]                                   # beta @ W, f32
    o_ref[...] = out.reshape(o_ref.shape).astype(o_ref.dtype)


def patch_merging_forward(x, gamma, beta, weight, *, mxu_dtype=jnp.bfloat16):
    """Exact semantics of PatchMerging.forward for a 5-D (B, D, H, W, C) input.

    gamma, beta: LayerNorm(8C) params, shape (8C,)
    weight:      Linear(8C -> 2C, bias=False) weight in JAX layout (8C, 2C)
                 (i.e. transpose of torch's (2C, 8C)).
    Returns (B, ceil(D/2), ceil(H/2), ceil(W/2), 2C).
    """
    b, d, h, w, c = x.shape
    if (d % 2) or (h % 2) or (w % 2):
        # F.pad(x, (0,0, 0,w%2, 0,h%2, 0,d%2)) pads right side only.
        x = jnp.pad(x, ((0, 0), (0, d % 2), (0, h % 2), (0, w % 2), (0, 0)))
    D2, H2, W2 = (d + 1) // 2, (h + 1) // 2, (w + 1) // 2
    C = c
    Kout = weight.shape[1]

    # Free row-major view: (B, D2, di, H2, hi, W2, 2C); lanes [0:C] <-> wi=0.
    xr = x.reshape(b, D2, 2, H2, 2, W2, 2 * C)

    # Fold LN affine + duplicated slices (x5==x2, x6==x3) into the weight.
    wf = weight.astype(jnp.float32)                    # (8C, 2C)
    g = gamma.astype(jnp.float32)
    blk = lambda j: wf[j * C:(j + 1) * C, :] * g[j * C:(j + 1) * C, None]
    zeros = jnp.zeros((C, Kout), jnp.float32)
    w_fused = jnp.concatenate(
        [blk(0), blk(3) + blk(6),     # (di,hi)=(0,0): [x0 | x3 (+x6 dup)]
         blk(1), blk(4),              # (di,hi)=(1,0): [x1 | x4]
         blk(2) + blk(5), zeros,      # (di,hi)=(0,1): [x2 (+x5 dup) | unused]
         zeros, blk(7)],              # (di,hi)=(1,1): [unused | x7]
        axis=0).astype(mxu_dtype)                      # (8C, Kout) bf16
    b_fused = (beta.astype(jnp.float32) @ wf).reshape(1, Kout)  # f32

    def xspec(di, hi):
        return pl.BlockSpec(
            (None, None, None, H2, None, W2, 2 * C),
            lambda bi, d2i, _di=di, _hi=hi: (bi, d2i, _di, 0, _hi, 0, 0))

    # VMEM footprint (per grid step, double-buffered) -> scoped limit.
    rows = H2 * W2
    est = (4 * rows * 2 * C * x.dtype.itemsize * 2        # parity input tiles
           + 8 * C * Kout * jnp.dtype(mxu_dtype).itemsize * 2   # fused weight
           + rows * Kout * x.dtype.itemsize * 2           # output tile
           + 4 * rows * 2 * C * 4                         # f32 working copies
           + (2 << 20))                                   # margin
    vmem_limit = int(min(64 << 20, max(est, 32 << 20)))   # v7x-safe cap

    kernel = functools.partial(_merge_ln_matmul_kernel,
                               C=C, inv_k=1.0 / (8.0 * C))
    out = pl.pallas_call(
        kernel,
        out_shape=jax.ShapeDtypeStruct((b, D2, H2, W2, Kout), x.dtype),
        grid_spec=pltpu.PrefetchScalarGridSpec(
            num_scalar_prefetch=0,
            grid=(b, D2),
            in_specs=[
                xspec(0, 0), xspec(1, 0), xspec(0, 1), xspec(1, 1),
                pl.BlockSpec((8 * C, Kout), lambda bi, d2i: (0, 0)),
                pl.BlockSpec((1, Kout), lambda bi, d2i: (0, 0)),
            ],
            out_specs=pl.BlockSpec((None, None, H2, W2, Kout),
                                   lambda bi, d2i: (bi, d2i, 0, 0, 0)),
        ),
        compiler_params=pltpu.CompilerParams(
            dimension_semantics=("parallel", "parallel"),
            vmem_limit_bytes=vmem_limit),
    )(xr, xr, xr, xr, w_fused, b_fused)
    return out


def _reference_jax(x, gamma, beta, weight):
    """Plain-JAX f32 reference (mirrors the torch code, incl. dup slices)."""
    b, d, h, w, c = x.shape
    if (d % 2) or (h % 2) or (w % 2):
        x = jnp.pad(x, ((0, 0), (0, d % 2), (0, h % 2), (0, w % 2), (0, 0)))
    x0 = x[:, 0::2, 0::2, 0::2, :]
    x1 = x[:, 1::2, 0::2, 0::2, :]
    x2 = x[:, 0::2, 1::2, 0::2, :]
    x3 = x[:, 0::2, 0::2, 1::2, :]
    x4 = x[:, 1::2, 0::2, 1::2, :]
    x5 = x[:, 0::2, 1::2, 0::2, :]
    x6 = x[:, 0::2, 0::2, 1::2, :]
    x7 = x[:, 1::2, 1::2, 1::2, :]
    xc = jnp.concatenate([x0, x1, x2, x3, x4, x5, x6, x7], axis=-1)
    mean = jnp.mean(xc, axis=-1, keepdims=True)
    var = jnp.mean((xc - mean) ** 2, axis=-1, keepdims=True)
    xn = (xc - mean) * jax.lax.rsqrt(var + LN_EPS) * gamma + beta
    return jnp.einsum("bdhwk,ko->bdhwo", xn, weight)


if __name__ == "__main__":
    key = jax.random.PRNGKey(0)
    k_x, k_w, k_g, k_b = jax.random.split(key, 4)

    # dim = 16  =>  LayerNorm over 8*dim = 128, Linear 128 -> 32
    dim = 16
    B, D, H, W = 2, 9, 16, 16        # odd D exercises the F.pad path
    x = jax.random.normal(k_x, (B, D, H, W, dim), dtype=jnp.float32)
    gamma = 1.0 + 0.1 * jax.random.normal(k_g, (8 * dim,), jnp.float32)
    beta = 0.1 * jax.random.normal(k_b, (8 * dim,), jnp.float32)
    weight = (jax.random.normal(k_w, (8 * dim, 2 * dim), jnp.float32)
              * (1.0 / float(jnp.sqrt(8.0 * dim))))

    out = jax.block_until_ready(patch_merging_forward(x, gamma, beta, weight))
    ref = jax.block_until_ready(_reference_jax(x, gamma, beta, weight))

    D2, H2, W2 = (D + 1) // 2, (H + 1) // 2, (W + 1) // 2
    assert out.shape == (B, D2, H2, W2, 2 * dim), out.shape
    # bf16 MXU operands with f32 stats/accumulation -> loose tolerance vs f32.
    err = float(jnp.max(jnp.abs(out - ref)))
    assert jnp.allclose(out, ref, atol=3e-2, rtol=3e-2), err
    print("KERNEL_OK")
</pallas_src>

<mosaic_0001>
module attributes {stable_mosaic.version = 11 : i64} {
  func.func @_merge_ln_matmul_kernel(%arg0: i32, %arg1: i32, %arg2: memref<1x1x1x8x1x8x32xf32, #tpu.memory_space<vmem>>, %arg3: memref<1x1x1x8x1x8x32xf32, #tpu.memory_space<vmem>>, %arg4: memref<1x1x1x8x1x8x32xf32, #tpu.memory_space<vmem>>, %arg5: memref<1x1x1x8x1x8x32xf32, #tpu.memory_space<vmem>>, %arg6: memref<128x32xbf16, #tpu.memory_space<vmem>>, %arg7: memref<1x32xf32, #tpu.memory_space<vmem>>, %arg8: memref<1x1x8x8x32xf32, #tpu.memory_space<vmem>>) attributes {dimension_semantics = [#tpu.dimension_semantics<parallel>, #tpu.dimension_semantics<parallel>], iteration_bounds = array<i64: 2, 5>, scalar_prefetch = 0 : i64, scratch_operands = 0 : i64, tpu.core_type = #tpu.core_type<tc>, window_params = [{transform_indices = @transform_0, window_bounds = array<i64: 1, 1, 1, 8, 1, 8, 32>}, {transform_indices = @transform_1, window_bounds = array<i64: 1, 1, 1, 8, 1, 8, 32>}, {transform_indices = @transform_2, window_bounds = array<i64: 1, 1, 1, 8, 1, 8, 32>}, {transform_indices = @transform_3, window_bounds = array<i64: 1, 1, 1, 8, 1, 8, 32>}, {pipeline_mode = #tpu.pipeline_mode<synchronous>, transform_indices = @transform_4, window_bounds = array<i64: 128, 32>}, {pipeline_mode = #tpu.pipeline_mode<synchronous>, transform_indices = @transform_5, window_bounds = array<i64: 1, 32>}, {transform_indices = @transform_6, window_bounds = array<i64: 1, 1, 8, 8, 32>}]} {
    %0 = tpu.iota {dimensions = array<i32: 1>} : vector<1x32xi32>
    %cst = arith.constant 0.000000e+00 : f32
    %1 = vector.broadcast %cst : f32 to vector<64x1xf32>
    %cst_0 = arith.constant 0.000000e+00 : f32
    %2 = vector.broadcast %cst_0 : f32 to vector<64x1xf32>
    %c0 = arith.constant 0 : index
    %c0_1 = arith.constant 0 : index
    %c0_2 = arith.constant 0 : index
    %c0_3 = arith.constant 0 : index
    %c0_4 = arith.constant 0 : index
    %c0_5 = arith.constant 0 : index
    %c0_6 = arith.constant 0 : index
    %3 = vector.load %arg2[%c0, %c0_1, %c0_2, %c0_3, %c0_4, %c0_5, %c0_6] : memref<1x1x1x8x1x8x32xf32, #tpu.memory_space<vmem>>, vector<1x1x1x8x1x8x32xf32>
    %4 = vector.shape_cast %3 : vector<1x1x1x8x1x8x32xf32> to vector<8x8x32xf32>
    %5 = vector.shape_cast %4 : vector<8x8x32xf32> to vector<64x32xf32>
    %c16_i32 = arith.constant 16 : i32
    %6 = vector.broadcast %c16_i32 : i32 to vector<1x32xi32>
    %7 = arith.cmpi slt, %0, %6 : vector<1x32xi32>
    %cst_7 = arith.constant 1.000000e+00 : f32
    %cst_8 = arith.constant 2.000000e+00 : f32
    %8 = vector.broadcast %cst_7 : f32 to vector<1x32xf32>
    %9 = vector.broadcast %cst_8 : f32 to vector<1x32xf32>
    %10 = arith.select %7, %8, %9 : vector<1x32xi1>, vector<1x32xf32>
    %11 = vector.broadcast %10 : vector<1x32xf32> to vector<64x32xf32>
    %12 = arith.mulf %5, %11 : vector<64x32xf32>
    %cst_9 = arith.constant dense<0.000000e+00> : vector<64xf32>
    %13 = vector.multi_reduction <add>, %12, %cst_9 [1] : vector<64x32xf32> to vector<64xf32>
    %14 = vector.shape_cast %13 : vector<64xf32> to vector<64x1xf32>
    %15 = arith.addf %1, %14 : vector<64x1xf32>
    %16 = arith.mulf %12, %5 : vector<64x32xf32>
    %cst_10 = arith.constant dense<0.000000e+00> : vector<64xf32>
    %17 = vector.multi_reduction <add>, %16, %cst_10 [1] : vector<64x32xf32> to vector<64xf32>
    %18 = vector.shape_cast %17 : vector<64xf32> to vector<64x1xf32>
    %19 = arith.addf %2, %18 : vector<64x1xf32>
    %c0_11 = arith.constant 0 : index
    %c0_12 = arith.constant 0 : index
    %c0_13 = arith.constant 0 : index
    %c0_14 = arith.constant 0 : index
    %c0_15 = arith.constant 0 : index
    %c0_16 = arith.constant 0 : index
    %c0_17 = arith.constant 0 : index
    %20 = vector.load %arg3[%c0_11, %c0_12, %c0_13, %c0_14, %c0_15, %c0_16, %c0_17] : memref<1x1x1x8x1x8x32xf32, #tpu.memory_space<vmem>>, vector<1x1x1x8x1x8x32xf32>
    %21 = vector.shape_cast %20 : vector<1x1x1x8x1x8x32xf32> to vector<8x8x32xf32>
    %22 = vector.shape_cast %21 : vector<8x8x32xf32> to vector<64x32xf32>
    %c16_i32_18 = arith.constant 16 : i32
    %23 = vector.broadcast %c16_i32_18 : i32 to vector<1x32xi32>
    %24 = arith.cmpi slt, %0, %23 : vector<1x32xi32>
    %cst_19 = arith.constant 1.000000e+00 : f32
    %cst_20 = arith.constant 1.000000e+00 : f32
    %25 = vector.broadcast %cst_19 : f32 to vector<1x32xf32>
    %26 = vector.broadcast %cst_20 : f32 to vector<1x32xf32>
    %27 = arith.select %24, %25, %26 : vector<1x32xi1>, vector<1x32xf32>
    %28 = vector.broadcast %27 : vector<1x32xf32> to vector<64x32xf32>
    %29 = arith.mulf %22, %28 : vector<64x32xf32>
    %cst_21 = arith.constant dense<0.000000e+00> : vector<64xf32>
    %30 = vector.multi_reduction <add>, %29, %cst_21 [1] : vector<64x32xf32> to vector<64xf32>
    %31 = vector.shape_cast %30 : vector<64xf32> to vector<64x1xf32>
    %32 = arith.addf %15, %31 : vector<64x1xf32>
    %33 = arith.mulf %29, %22 : vector<64x32xf32>
    %cst_22 = arith.constant dense<0.000000e+00> : vector<64xf32>
    %34 = vector.multi_reduction <add>, %33, %cst_22 [1] : vector<64x32xf32> to vector<64xf32>
    %35 = vector.shape_cast %34 : vector<64xf32> to vector<64x1xf32>
    %36 = arith.addf %19, %35 : vector<64x1xf32>
    %c0_23 = arith.constant 0 : index
    %c0_24 = arith.constant 0 : index
    %c0_25 = arith.constant 0 : index
    %c0_26 = arith.constant 0 : index
    %c0_27 = arith.constant 0 : index
    %c0_28 = arith.constant 0 : index
    %c0_29 = arith.constant 0 : index
    %37 = vector.load %arg4[%c0_23, %c0_24, %c0_25, %c0_26, %c0_27, %c0_28, %c0_29] : memref<1x1x1x8x1x8x32xf32, #tpu.memory_space<vmem>>, vector<1x1x1x8x1x8x32xf32>
    %38 = vector.shape_cast %37 : vector<1x1x1x8x1x8x32xf32> to vector<8x8x32xf32>
    %39 = vector.shape_cast %38 : vector<8x8x32xf32> to vector<64x32xf32>
    %c16_i32_30 = arith.constant 16 : i32
    %40 = vector.broadcast %c16_i32_30 : i32 to vector<1x32xi32>
    %41 = arith.cmpi slt, %0, %40 : vector<1x32xi32>
    %cst_31 = arith.constant 2.000000e+00 : f32
    %cst_32 = arith.constant 0.000000e+00 : f32
    %42 = vector.broadcast %cst_31 : f32 to vector<1x32xf32>
    %43 = vector.broadcast %cst_32 : f32 to vector<1x32xf32>
    %44 = arith.select %41, %42, %43 : vector<1x32xi1>, vector<1x32xf32>
    %45 = vector.broadcast %44 : vector<1x32xf32> to vector<64x32xf32>
    %46 = arith.mulf %39, %45 : vector<64x32xf32>
    %cst_33 = arith.constant dense<0.000000e+00> : vector<64xf32>
    %47 = vector.multi_reduction <add>, %46, %cst_33 [1] : vector<64x32xf32> to vector<64xf32>
    %48 = vector.shape_cast %47 : vector<64xf32> to vector<64x1xf32>
    %49 = arith.addf %32, %48 : vector<64x1xf32>
    %50 = arith.mulf %46, %39 : vector<64x32xf32>
    %cst_34 = arith.constant dense<0.000000e+00> : vector<64xf32>
    %51 = vector.multi_reduction <add>, %50, %cst_34 [1] : vector<64x32xf32> to vector<64xf32>
    %52 = vector.shape_cast %51 : vector<64xf32> to vector<64x1xf32>
    %53 = arith.addf %36, %52 : vector<64x1xf32>
    %c0_35 = arith.constant 0 : index
    %c0_36 = arith.constant 0 : index
    %c0_37 = arith.constant 0 : index
    %c0_38 = arith.constant 0 : index
    %c0_39 = arith.constant 0 : index
    %c0_40 = arith.constant 0 : index
    %c0_41 = arith.constant 0 : index
    %54 = vector.load %arg5[%c0_35, %c0_36, %c0_37, %c0_38, %c0_39, %c0_40, %c0_41] : memref<1x1x1x8x1x8x32xf32, #tpu.memory_space<vmem>>, vector<1x1x1x8x1x8x32xf32>
    %55 = vector.shape_cast %54 : vector<1x1x1x8x1x8x32xf32> to vector<8x8x32xf32>
    %56 = vector.shape_cast %55 : vector<8x8x32xf32> to vector<64x32xf32>
    %c16_i32_42 = arith.constant 16 : i32
    %57 = vector.broadcast %c16_i32_42 : i32 to vector<1x32xi32>
    %58 = arith.cmpi slt, %0, %57 : vector<1x32xi32>
    %cst_43 = arith.constant 0.000000e+00 : f32
    %cst_44 = arith.constant 1.000000e+00 : f32
    %59 = vector.broadcast %cst_43 : f32 to vector<1x32xf32>
    %60 = vector.broadcast %cst_44 : f32 to vector<1x32xf32>
    %61 = arith.select %58, %59, %60 : vector<1x32xi1>, vector<1x32xf32>
    %62 = vector.broadcast %61 : vector<1x32xf32> to vector<64x32xf32>
    %63 = arith.mulf %56, %62 : vector<64x32xf32>
    %cst_45 = arith.constant dense<0.000000e+00> : vector<64xf32>
    %64 = vector.multi_reduction <add>, %63, %cst_45 [1] : vector<64x32xf32> to vector<64xf32>
    %65 = vector.shape_cast %64 : vector<64xf32> to vector<64x1xf32>
    %66 = arith.addf %49, %65 : vector<64x1xf32>
    %67 = arith.mulf %63, %56 : vector<64x32xf32>
    %cst_46 = arith.constant dense<0.000000e+00> : vector<64xf32>
    %68 = vector.multi_reduction <add>, %67, %cst_46 [1] : vector<64x32xf32> to vector<64xf32>
    %69 = vector.shape_cast %68 : vector<64xf32> to vector<64x1xf32>
    %70 = arith.addf %53, %69 : vector<64x1xf32>
    %cst_47 = arith.constant 7.812500e-03 : f32
    %71 = vector.broadcast %cst_47 : f32 to vector<64x1xf32>
    %72 = arith.mulf %66, %71 : vector<64x1xf32>
    %cst_48 = arith.constant 7.812500e-03 : f32
    %73 = vector.broadcast %cst_48 : f32 to vector<64x1xf32>
    %74 = arith.mulf %70, %73 : vector<64x1xf32>
    %75 = arith.mulf %72, %72 : vector<64x1xf32>
    %76 = arith.subf %74, %75 : vector<64x1xf32>
    %cst_49 = arith.constant 9.99999974E-6 : f32
    %77 = vector.broadcast %cst_49 : f32 to vector<64x1xf32>
    %78 = arith.addf %76, %77 : vector<64x1xf32>
    %79 = math.rsqrt %78 : vector<64x1xf32>
    %cst_50 = arith.constant 0.000000e+00 : f32
    %80 = vector.broadcast %cst_50 : f32 to vector<64x32xf32>
    %81 = vector.broadcast %72 : vector<64x1xf32> to vector<64x32xf32>
    %82 = arith.subf %5, %81 : vector<64x32xf32>
    %83 = vector.broadcast %79 : vector<64x1xf32> to vector<64x32xf32>
    %84 = arith.mulf %82, %83 : vector<64x32xf32>
    %85 = arith.truncf %84 : vector<64x32xf32> to vector<64x32xbf16>
    %c0_51 = arith.constant 0 : index
    %c0_52 = arith.constant 0 : index
    %86 = vector.load %arg6[%c0_51, %c0_52] : memref<128x32xbf16, #tpu.memory_space<vmem>>, vector<32x32xbf16>
    %cst_53 = arith.constant dense<0.000000e+00> : vector<64x32xf32>
    %87 = tpu.matmul %85, %86, %cst_53 {dimension_numbers = #tpu.dot_dimension_numbers<[1], [0], [0], [1], [0, 0, 1, 1], [], []>} : vector<64x32xbf16>, vector<32x32xbf16>, vector<64x32xf32> -> vector<64x32xf32>
    %88 = arith.addf %80, %87 : vector<64x32xf32>
    %89 = vector.broadcast %72 : vector<64x1xf32> to vector<64x32xf32>
    %90 = arith.subf %22, %89 : vector<64x32xf32>
    %91 = vector.broadcast %79 : vector<64x1xf32> to vector<64x32xf32>
    %92 = arith.mulf %90, %91 : vector<64x32xf32>
    %93 = arith.truncf %92 : vector<64x32xf32> to vector<64x32xbf16>
    %c32 = arith.constant 32 : index
    %c0_54 = arith.constant 0 : index
    %94 = vector.load %arg6[%c32, %c0_54] : memref<128x32xbf16, #tpu.memory_space<vmem>>, vector<32x32xbf16>
    %cst_55 = arith.constant dense<0.000000e+00> : vector<64x32xf32>
    %95 = tpu.matmul %93, %94, %cst_55 {dimension_numbers = #tpu.dot_dimension_numbers<[1], [0], [0], [1], [0, 0, 1, 1], [], []>} : vector<64x32xbf16>, vector<32x32xbf16>, vector<64x32xf32> -> vector<64x32xf32>
    %96 = arith.addf %88, %95 : vector<64x32xf32>
    %97 = vector.broadcast %72 : vector<64x1xf32> to vector<64x32xf32>
    %98 = arith.subf %39, %97 : vector<64x32xf32>
    %99 = vector.broadcast %79 : vector<64x1xf32> to vector<64x32xf32>
    %100 = arith.mulf %98, %99 : vector<64x32xf32>
    %101 = arith.truncf %100 : vector<64x32xf32> to vector<64x32xbf16>
    %c64 = arith.constant 64 : index
    %c0_56 = arith.constant 0 : index
    %102 = vector.load %arg6[%c64, %c0_56] : memref<128x32xbf16, #tpu.memory_space<vmem>>, vector<32x32xbf16>
    %cst_57 = arith.constant dense<0.000000e+00> : vector<64x32xf32>
    %103 = tpu.matmul %101, %102, %cst_57 {dimension_numbers = #tpu.dot_dimension_numbers<[1], [0], [0], [1], [0, 0, 1, 1], [], []>} : vector<64x32xbf16>, vector<32x32xbf16>, vector<64x32xf32> -> vector<64x32xf32>
    %104 = arith.addf %96, %103 : vector<64x32xf32>
    %105 = vector.broadcast %72 : vector<64x1xf32> to vector<64x32xf32>
    %106 = arith.subf %56, %105 : vector<64x32xf32>
    %107 = vector.broadcast %79 : vector<64x1xf32> to vector<64x32xf32>
    %108 = arith.mulf %106, %107 : vector<64x32xf32>
    %109 = arith.truncf %108 : vector<64x32xf32> to vector<64x32xbf16>
    %c96 = arith.constant 96 : index
    %c0_58 = arith.constant 0 : index
    %110 = vector.load %arg6[%c96, %c0_58] : memref<128x32xbf16, #tpu.memory_space<vmem>>, vector<32x32xbf16>
    %cst_59 = arith.constant dense<0.000000e+00> : vector<64x32xf32>
    %111 = tpu.matmul %109, %110, %cst_59 {dimension_numbers = #tpu.dot_dimension_numbers<[1], [0], [0], [1], [0, 0, 1, 1], [], []>} : vector<64x32xbf16>, vector<32x32xbf16>, vector<64x32xf32> -> vector<64x32xf32>
    %112 = arith.addf %104, %111 : vector<64x32xf32>
    %c0_60 = arith.constant 0 : index
    %c0_61 = arith.constant 0 : index
    %113 = vector.load %arg7[%c0_60, %c0_61] : memref<1x32xf32, #tpu.memory_space<vmem>>, vector<1x32xf32>
    %114 = vector.broadcast %113 : vector<1x32xf32> to vector<64x32xf32>
    %115 = arith.addf %112, %114 : vector<64x32xf32>
    %116 = vector.shape_cast %115 : vector<64x32xf32> to vector<8x8x32xf32>
    %c0_62 = arith.constant 0 : index
    %c0_63 = arith.constant 0 : index
    %c0_64 = arith.constant 0 : index
    %c0_65 = arith.constant 0 : index
    %c0_66 = arith.constant 0 : index
    %117 = vector.load %arg8[%c0_62, %c0_63, %c0_64, %c0_65, %c0_66] : memref<1x1x8x8x32xf32, #tpu.memory_space<vmem>>, vector<1x1x8x8x32xf32>
    %118 = vector.shape_cast %117 : vector<1x1x8x8x32xf32> to vector<8x8x32xf32>
    %119 = vector.shape_cast %116 : vector<8x8x32xf32> to vector<1x1x8x8x32xf32>
    tpu.vector_store %arg8[%c0_62, %c0_63, %c0_64, %c0_65, %c0_66], %119 {strides = array<i32>} : memref<1x1x8x8x32xf32, #tpu.memory_space<vmem>>, vector<1x1x8x8x32xf32>,
    return
  }
  func.func @transform_0(%arg0: i32, %arg1: i32) -> (i32, i32, i32, i32, i32, i32, i32) {
    %c0_i32 = arith.constant 0 : i32
    %c0_i32_0 = arith.constant 0 : i32
    %c0_i32_1 = arith.constant 0 : i32
    %c0_i32_2 = arith.constant 0 : i32
    %c0_i32_3 = arith.constant 0 : i32
    %c0_i32_4 = arith.constant 0 : i32
    return %arg0, %arg1, %c0_i32, %c0_i32_0, %c0_i32_1, %c0_i32_2, %c0_i32_3 : i32, i32, i32, i32, i32, i32, i32
  }
  func.func @transform_1(%arg0: i32, %arg1: i32) -> (i32, i32, i32, i32, i32, i32, i32) {
    %c1_i32 = arith.constant 1 : i32
    %c0_i32 = arith.constant 0 : i32
    %c0_i32_0 = arith.constant 0 : i32
    %c0_i32_1 = arith.constant 0 : i32
    %c0_i32_2 = arith.constant 0 : i32
    %c0_i32_3 = arith.constant 0 : i32
    return %arg0, %arg1, %c1_i32, %c0_i32, %c0_i32_0, %c0_i32_1, %c0_i32_2 : i32, i32, i32, i32, i32, i32, i32
  }
  func.func @transform_2(%arg0: i32, %arg1: i32) -> (i32, i32, i32, i32, i32, i32, i32) {
    %c0_i32 = arith.constant 0 : i32
    %c0_i32_0 = arith.constant 0 : i32
    %c1_i32 = arith.constant 1 : i32
    %c0_i32_1 = arith.constant 0 : i32
    %c0_i32_2 = arith.constant 0 : i32
    %c0_i32_3 = arith.constant 0 : i32
    return %arg0, %arg1, %c0_i32, %c0_i32_0, %c1_i32, %c0_i32_1, %c0_i32_2 : i32, i32, i32, i32, i32, i32, i32
  }
  func.func @transform_3(%arg0: i32, %arg1: i32) -> (i32, i32, i32, i32, i32, i32, i32) {
    %c1_i32 = arith.constant 1 : i32
    %c0_i32 = arith.constant 0 : i32
    %c1_i32_0 = arith.constant 1 : i32
    %c0_i32_1 = arith.constant 0 : i32
    %c0_i32_2 = arith.constant 0 : i32
    %c0_i32_3 = arith.constant 0 : i32
    return %arg0, %arg1, %c1_i32, %c0_i32, %c1_i32_0, %c0_i32_1, %c0_i32_2 : i32, i32, i32, i32, i32, i32, i32
  }
  func.func @transform_4(%arg0: i32, %arg1: i32) -> (i32, i32) {
    %c0_i32 = arith.constant 0 : i32
    %c0_i32_0 = arith.constant 0 : i32
    %c0_i32_1 = arith.constant 0 : i32
    return %c0_i32, %c0_i32_0 : i32, i32
  }
  func.func @transform_5(%arg0: i32, %arg1: i32) -> (i32, i32) {
    %c0_i32 = arith.constant 0 : i32
    %c0_i32_0 = arith.constant 0 : i32
    %c0_i32_1 = arith.constant 0 : i32
    return %c0_i32, %c0_i32_0 : i32, i32
  }
  func.func @transform_6(%arg0: i32, %arg1: i32) -> (i32, i32, i32, i32, i32) {
    %c0_i32 = arith.constant 0 : i32
    %c0_i32_0 = arith.constant 0 : i32
    %c0_i32_1 = arith.constant 0 : i32
    %c0_i32_2 = arith.constant 0 : i32
    return %arg0, %arg1, %c0_i32, %c0_i32_0, %c0_i32_1 : i32, i32, i32, i32, i32
  }
}

</mosaic_0001>

<bundles_post_ra>
// kernel: tpu_custom_call.1
= control target key start
LH: loop header
LB: loop body
LE: loop exit
PB: predicated region body
PF: predicated region fallthrough
CT: control target
= control target key end

     0   :  { %s2624_s0 = inlined_call_operand.hbm [shape: f32[2,5,2,8,2,8,32], index: 0, kind: input, shape index: {}]   ;;  %s2625_s1 = inlined_call_operand.hbm [shape: f32[2,5,2,8,2,8,32], index: 1, kind: input, shape index: {}]   ;;  %s2626_s2 = inlined_call_operand.hbm [shape: f32[2,5,2,8,2,8,32], index: 2, kind: input, shape index: {}]   ;;  %s2627_s3 = inlined_call_operand.hbm [shape: f32[2,5,2,8,2,8,32], index: 3, kind: input, shape index: {}]   ;;  %s2628_s4 = inlined_call_operand.vmem [shape: bf16[128,32], index: 4, kind: input, shape index: {}]   ;;  %s2629_s5 = inlined_call_operand.hbm [shape: f32[1,32], index: 5, kind: input, shape index: {}]   ;;  %s2630_s6 = inlined_call_operand.hbm [shape: f32[2,5,8,8,32], index: 6, kind: output, shape index: {}]  }
   0x1   :  { %2641 = sst [smem:[#allocation26_spill]] %s2624_s0 }
   0x2   :  { %2642 = sst [smem:[#allocation27_spill]] %s2625_s1 }
   0x3   :  { %2643 = sst [smem:[#allocation28_spill]] %s2629_s5 }
   0x4   :  { %11 = vsyncpa [#allocation3], 0 }
   0x5   :  { %13 = vsyncpa [#allocation3 + $0x1], 0 }
   0x6   :  { %14 = vsyncpa [#allocation6], 0 }
   0x7   :  { %16 = vsyncpa [#allocation6 + $0x1], 0 }
   0x8   :  { %17 = vsyncpa [#allocation9], 0 }
   0x9   :  { %19 = vsyncpa [#allocation9 + $0x1], 0 }
   0xa   :  { %20 = vsyncpa [#allocation4], 0 }
   0xb   :  { %22 = vsyncpa [#allocation4 + $0x1], 0  ;;  %s1975_s21 = smov 0   ;;  %s1977_s22 = smov 0  }
   0xc   :  { %s1979_s23 = smov 0   ;;  %s1981_s24 = smov 0  }
   0xd   :  { %s1983_s25 = smov 0   ;;  %s1985_s26 = smov 0  }
   0xe   :  { %s1987_s27 = smov 0   ;;  %s1989_s28 = smov 0  }
   0xf LB: > { %2644 = sst [smem:[#allocation17_spill]] %s1901_s21  ;;  %s2016_s29 = sadd.s32 4294967295, %s1929_s28   ;;  %s1929_s28 = sphi %s1989_s28, %s28_s28   ;;  %s1925_s27 = sphi %s1987_s27, %s2671_s27   ;;  %s1921_s26 = sphi %s1985_s26, %s2670_s26   ;;  %s1917_s25 = sphi %s1983_s25, %s2669_s25   ;;  %s1913_s24 = sphi %s1981_s24, %s2668_s24   ;;  %s1909_s23 = sphi %s1979_s23, %s2667_s23   ;;  %s1905_s22 = sphi %s1977_s22, %s2673_s22   ;;  %s1901_s21 = sphi %s1975_s21, %s2672_s21  }
  0x10   : > { %2645 = sst [smem:[#allocation18_spill]] %s1909_s23  ;;  %s1454_s30 = sadd.s32 4294967294, %s1929_s28  }
  0x11   : > { %2646 = sst [smem:[#allocation19_spill]] %s1921_s26  ;;  %s37_s7 = sadd.s32 1, %s1921_s26 }
  0x12   : > { %2647 = sst [smem:[#allocation20_spill]] %s1925_s27  ;;  %s40_s8 = sadd.s32 1, %s1925_s27 }
  0x13   : > { %p38_p0 = scmp.ge.s32.totalorder %s37_s7, 5  ;;  %s49_s9 = sadd.s32 1, %s1909_s23 }
  0x14   : > { %p56_p1 = scmp.ne.s32.totalorder %s1909_s23, %s1905_s22  ;;  %p57_p2 = scmp.eq.s32.totalorder %s1929_s28, 0 }
  0x15   : > { %s2675_s7 = smov (%p38_p0, %s37_s7), 0  ;;  %s2677_s8 = smov (!%p38_p0, %s40_s8), %s1925_s27 }
  0x16   : > { %2648 = sst [smem:[#allocation21_spill]] %s2675_s7  ;;  %s45_s10 = ssub.s32 %s1921_s26, %s2675_s7 }
  0x17   : > { %p2030_p3 = por %p57_p2, %p56_p1  ;;  %p42_p4 = scmp.ge.s32.totalorder %s2677_s8, 2 }
  0x18   : > { %p62_p5 = scmp.ne.s32.totalorder %s1905_s22, %s1901_s21  ;;  %p63_p6 = scmp.eq.s32.totalorder %s2016_s29, 0 }
  0x19   : > { %p214_p7 = scmp.eq.s32.totalorder %s2016_s29, 9  ;;  %s2679_s8 = smov (%p42_p4, %s2677_s8), 0 }
  0x1a   : > { %2650 = sst [smem:[#allocation22_spill]] %s2679_s8  ;;  %p2042_p8 = por %p63_p6, %p62_p5 }
  0x1b   : > { %p2046_p9 = por %p214_p7, %p56_p1  ;;  %s44_s14 = ssub.s32 %s1925_s27, %s2679_s8 }
  0x1c   : > { %p220_p10 = scmp.eq.s32.totalorder %s1454_s30, 9  ;;  %s46_s15 = sor.u32 %s45_s10, %s44_s14 }
  0x1d   : > { %s2652_s13 = scalar_select %p2046_p9, 1, 0 }
  0x1e   : > { %p1455_p11 = scmp.ge.s32.totalorder %s1929_s28, 1  ;;  %p47_p12 = scmp.eq.s32.totalorder %s46_s15, 0 }
  0x1f   : > { %2653 = sst [smem:[#allocation23_spill]] %s2652_s13  ;;  %p2053_p13 = por %p220_p10, %p62_p5 }
  0x20   : > { %p227_p0 = scmp.lt.s32.totalorder %s1929_s28, 11  ;;  %s2658_s5 = sld [smem:[#allocation28_spill]] }
  0x21   : > { %s2654_s16 = scalar_select %p2053_p13, 1, 0 }
  0x22   : > { %s2059_s17 = scalar_select %p47_p12, %s1909_s23, %s49_s9  }
  0x23   : > { %2655 = sst [smem:[#allocation24_spill]] %s2654_s16  ;;  %p2061_p1 = pnand %p1455_p11, %p227_p0 }
  0x24   : > { %2656 = sst [smem:[#allocation25_spill]] %s2059_s17  ;;  %s1931_s10 = smov [#allocation10]  }
  0x25   : > { %p1554_p2 = pneg %p2061_p1  ;;  %s244_s14 = sshll.u32 %s1931_s10, 4  ;;  %s245_s14 = int_to_ptr.vmem [resolvable:$true] %s244_s14 }
  0x26   : > { %s242_s30 = sshll.u32 %s2658_s5, 4  ;;  %p1576_p5 = scmp.lt.s32.totalorder %s1929_s28, 10  ;;  %s243_s30 = int_to_ptr.hbm [resolvable:$true] %s242_s30 }
  0x27   : > { %p1555_p4 = pnand %p1554_p2, %p63_p6  ;;  %s255_s9 = sand.u32 1, %s1909_s23  }
  0x28   : > { %s1459_s15 = sshll.u32 %s1921_s26, 5  ;;  %p2077_p7 = pnand %p1576_p5, %p2030_p3 }
  0x29   : > { %1557 = dma.hbm_to_vmem [thread:$0]  (!%p1555_p4), %s243_s30, 16, %s245_s14, [#allocation9]  }
  0x2a   : > { %s2081_s19 = sshll.u32 %s255_s9, 6  ;;  %s1538_s20 = smul.u32 160, %s1925_s27 }
  0x2b   : > { %s2637_s10 = sand.u32 1, %s1929_s28   ;;  %s2660_s1 = sld [smem:[#allocation27_spill]] }
  0x2c   : > { %s264_s5 = sadd.s32 %s1538_s20, %s1459_s15  ;;  %s283_s16 = scalar_lea.vmem [#allocation5], %s2081_s19 }
  0x2d   : > { %s2085_s7 = sshll.u32 %s264_s5, 3  ;;  %s294_s21 = sshll.u32 %s283_s16, 4  ;;  %s295_s21 = int_to_ptr.vmem [resolvable:$true] %s294_s21 }
  0x2e   : > { %s280_s14 = scalar_lea.sflag [#allocation6], %s2637_s10  ;;  %s1932_s15 = smov 256  }
  0x2f   : > { %s1933_s5 = smov 128   ;;  %s1934_s20 = smov 8  }
  0x30   : > { %s2661_s0 = sld [smem:[#allocation26_spill]]  ;;  %s256_s10 = scalar_lea.sflag [#allocation3], %s255_s9 }
  0x31   : > { %s1324_s11 = scalar_lea.hbm %s2660_s1, %s2085_s7  ;;  %s308_s23 = scalar_lea.vmem [#allocation7], %s2081_s19 }
  0x32   : > { %s1325_s26 = scalar_lea.hbm %s1324_s11, 128  ;;  %s319_s17 = sshll.u32 %s308_s23, 4  ;;  %s320_s17 = int_to_ptr.vmem [resolvable:$true] %s319_s17 }
  0x33   : > { %s292_s30 = sshll.u32 %s1325_s26, 4  ;;  %s259_s26 = scalar_lea.vmem [#allocation2], %s2081_s19  ;;  %s293_s30 = int_to_ptr.hbm [resolvable:$true] %s292_s30 }
  0x34   : > { %1564 = dma.hbm_to_vmem [thread:$0]  (!%p2077_p7), %s293_s30, 1024, %s295_s21, %s280_s14, %s1932_s15, %s1933_s5, %s1934_s20  }
  0x35   : > { %s269_s11 = sshll.u32 %s259_s26, 4  ;;  %s1333_s30 = scalar_lea.hbm %s2626_s2, %s2085_s7  ;;  %s270_s11 = int_to_ptr.vmem [resolvable:$true] %s269_s11 }
  0x36   : > { %s266_s16 = scalar_lea.hbm %s2661_s0, %s2085_s7  ;;  %s1334_s0 = scalar_lea.hbm %s1333_s30, 8 }
  0x37   : > { %s267_s1 = sshll.u32 %s266_s16, 4  ;;  %s317_s26 = sshll.u32 %s1334_s0, 4  ;;  %s268_s1 = int_to_ptr.hbm [resolvable:$true] %s267_s1  ;;  %s318_s26 = int_to_ptr.hbm [resolvable:$true] %s317_s26 }
  0x38   : > { %1561 = dma.hbm_to_vmem [thread:$0]  (!%p2077_p7), %s268_s1, 1024, %s270_s11, %s256_s10, %s1932_s15, %s1933_s5, %s1934_s20  }
  0x39   : > { %s1342_s9 = scalar_lea.hbm %s2627_s3, %s2085_s7  ;;  %s333_s27 = scalar_lea.vmem [#allocation8], %s2081_s19 }
  0x3a   : > { %1567 = dma.hbm_to_vmem [thread:$0]  (!%p2077_p7), %s318_s26, 1024, %s320_s17, %s280_s14, %s1932_s15, %s1933_s5, %s1934_s20  }
  0x3b   : > { %s1343_s1 = scalar_lea.hbm %s1342_s9, 136  ;;  %s344_s10 = sshll.u32 %s333_s27, 4  ;;  %s345_s10 = int_to_ptr.vmem [resolvable:$true] %s344_s10 }
  0x3c   : > { %s342_s11 = sshll.u32 %s1343_s1, 4  ;;  %s2662_s21 = sand.u32 1, %s1929_s28   ;;  %s343_s11 = int_to_ptr.hbm [resolvable:$true] %s342_s11 }
  0x3d   : > { %s330_s30 = scalar_lea.sflag [#allocation9], %s2662_s21  ;;  %356 = sbr.rel (%p2061_p1) target bundleno = 549 (0x225), region = 44 }
  0x3e   : > { %1570 = dma.hbm_to_vmem [thread:$0]  (!%p2077_p7), %s343_s11, 1024, %s345_s10, %s330_s30, %s1932_s15, %s1933_s5, %s1934_s20  }
  0x3f   : > { %s2134_s0 = sand.u32 (!%p2061_p1), 1, %s1905_s22  }
  0x40   : > { %s2137_s7 = sshll.u32 (!%p2061_p1), %s2134_s0, 6  ;;  %s359_s13 = scalar_lea.sflag (!%p2061_p1), [#allocation3], %s2134_s0 }
  0x41   : > { %s2141_s19 = scalar_lea.vmem (!%p2061_p1), [#allocation2], %s2137_s7 }
  0x42   : > { %1880 = dma.done.wait (%p2042_p8), %s359_s13, 1024  }
  0x43   : > { %1882 = vsyncadd (%p2042_p8), %s359_s13, 4294966272  ;;  %s368_s8 = sand.u32 1, %s2016_s29   ;;  %s2149_s14 = scalar_lea.vmem [#allocation5], %s2137_s7 }
  0x44   : > { %s369_s18 = scalar_lea.sflag [#allocation6], %s368_s8 }
  0x45   : > { %1884 = dma.done.wait (%p2042_p8), %s369_s18, 2048  }
  0x46   : > { %1886 = vsyncadd (%p2042_p8), %s369_s18, 4294965248  ;;  %s2156_s15 = scalar_lea.vmem [#allocation7], %s2137_s7  ;;  %s389_s5 = scalar_lea.sflag [#allocation9], %s368_s8 }
  0x47   : > { %s2159_s20 = scalar_lea.vmem [#allocation8], %s2137_s7 }
  0x48   : > { %1888 = dma.done.wait (%p2042_p8), %s389_s5, 1024  }
  0x49   : > { %1890 = vsyncadd (%p2042_p8), %s389_s5, 4294966272 }
  0x4a   : > { %1892 = dma.done.wait (%p63_p6), [#allocation9], 16  }
  0x4b   : > { %1894 = vsyncadd (%p63_p6), [#allocation9], 4294967280  ;;  %v443_v0 = vlaneseq  ;;  %vm463_vm1 = vcmask 261120   ;;  %v1935_v2 = vmov 2.0   ;;  %v2173_v4 = vld [vmem:[%s2149_s14] sm:$0xff]  ;;  %v2183_v8 = vld [vmem:[%s2141_s19 + $0x8] sm:$0xff] }
  0x4c   : > { %v2176_v5 = vld [vmem:[%s2141_s19] sm:$0xff]  ;;  %v544_v6 = vsel %vm463_vm1, %v2173_v4, 0.0  ;;  %v2190_v12 = vld [vmem:[%s2149_s14 + $0x8] sm:$0xff]  ;;  %v1936_v20 = vmov 0.0   ;;  %v576_v22 = vmul.f32 %v2173_v4, %v2173_v4  ;;  %v1937_v33 = vmov 1.0   ;;  %v2239_v42 = vld [vmem:[%s2141_s19 + $0x10] sm:$0xff] }
  0x4d   : > { %v444_v1 = vand.u32 127, %v443_v0  ;;  %545 = vadd.xlane.f32.xlu1 %v544_v6  ;;  %v547_v14 = vsel %vm463_vm1, %v2190_v12, 0.0  ;;  %v577_v18 = vmul.f32 %v2190_v12, %v2190_v12  ;;  %v2201_v19 = vld [vmem:[%s2156_s15] sm:$0xff]  ;;  %v2212_v25 = vld [vmem:[%s2156_s15 + $0x8] sm:$0xff]  ;;  %v2246_v46 = vld [vmem:[%s2141_s19 + $0x18] sm:$0xff]  ;;  %s2554_s18 = scalar_lea.vmem [#allocation11], %s2137_s7 }
  0x4e   : > { %v584_v26 = vsel %vm463_vm1, %v576_v22, 0.0  ;;  %v2222_v32 = vld [vmem:[%s2159_s20 + $0x8] sm:$0xff]  ;;  %v2228_v35 = vld [vmem:[%s2159_s20] sm:$0xff]  ;;  %v2255_v52 = vld [vmem:[%s2149_s14 + $0x18] sm:$0xff]  ;;  %s1539_s7 = smul.u32 40, %s1917_s25  ;;  %s1273_s25 = sshll.u32 %s2554_s18, 4  ;;  %s1274_s25 = int_to_ptr.vmem [resolvable:$true] %s1273_s25 }
  0x4f   : > { %vm453_vm0 = vcmp.lt.s32.totalorder %v444_v1, 16  ;;  %v587_v23 = vsel %vm463_vm1, %v577_v18, 0.0  ;;  %v2258_v53 = vld [vmem:[%s2149_s14 + $0x10] sm:$0xff]  ;;  %v553_v54 = vsel %vm463_vm1, %v2255_v52, 0.0  ;;  %v579_v61 = vmul.f32 %v2255_v52, %v2255_v52  ;;  %v2273_v62 = vld [vmem:[%s2156_s15 + $0x18] sm:$0xff]  ;;  %s1259_s17 = scalar_lea.sflag [#allocation4], %s2134_s0 }
  0x50   : > { %v2170_v3 = vsel %vm453_vm0, 1.0, %v1935_v2  ;;  %v2204_v21 = vsel %vm453_vm0, 2.0, %v1936_v20  ;;  %v2225_v34 = vsel %vm453_vm0, 0.0, %v1937_v33  ;;  %v550_v56 = vsel %vm463_vm1, %v2258_v53, 0.0  ;;  %v2276_v63 = vld [vmem:[%s2156_s15 + $0x10] sm:$0xff]  ;;  %v2316_v33 = vld [vmem:[%s2149_s14 + $0x20] sm:$0xff] }
  0x51   : > { %v455_v7 = vmul.f32 %v2170_v3, %v2176_v5  ;;  %v456_v11 = vmul.f32 %v2170_v3, %v2183_v8  ;;  %v625_v24 = vmul.f32 %v2204_v21, %v2201_v19  ;;  %v626_v29 = vmul.f32 %v2204_v21, %v2212_v25  ;;  %s1839_s27 = scalar_lea.hbm %s2630_s6, 640 }
  0x52   : > { %v715_v38 = vmul.f32 %v2225_v34, %v2222_v32  ;;  %v714_v39 = vmul.f32 %v2225_v34, %v2228_v35  ;;  %v457_v45 = vmul.f32 %v2170_v3, %v2239_v42  ;;  %v458_v49 = vmul.f32 %v2170_v3, %v2246_v46 }
  0x53   : > { %v464_v9 = vsel %vm463_vm1, %v455_v7, 0.0  ;;  %v496_v10 = vmul.f32 %v455_v7, %v2176_v5  ;;  %v497_v15 = vmul.f32 %v456_v11, %v2183_v8  ;;  %v467_v16 = vsel %vm463_vm1, %v456_v11, 0.0 }
  0x54   : > { %465 = vadd.xlane.f32.xlu0 %v464_v9  ;;  %v633_v27 = vsel %vm463_vm1, %v625_v24, 0.0  ;;  %v665_v28 = vmul.f32 %v625_v24, %v2201_v19  ;;  %v666_v31 = vmul.f32 %v626_v29, %v2212_v25  ;;  %v636_v36 = vsel %vm463_vm1, %v626_v29, 0.0  ;;  %v2304_v24 = vld [vmem:[%s2141_s19 + $0x20] sm:$0xff] }
  0x55   : > { %v504_v13 = vsel %vm463_vm1, %v496_v10, 0.0  ;;  %548 = vadd.xlane.f32.xlu1 %v547_v14  ;;  %v507_v17 = vsel %vm463_vm1, %v497_v15, 0.0  ;;  %v725_v40 = vsel %vm463_vm1, %v715_v38, 0.0  ;;  %v754_v41 = vmul.f32 %v714_v39, %v2228_v35  ;;  %v2287_v10 = vld [vmem:[%s2159_s20 + $0x10] sm:$0xff]  ;;  %v2294_v15 = vld [vmem:[%s2159_s20 + $0x18] sm:$0xff] }
  0x56   : > { %505 = vadd.xlane.f32.xlu2 %v504_v13  ;;  %v673_v30 = vsel %vm463_vm1, %v665_v28, 0.0  ;;  %v676_v37 = vsel %vm463_vm1, %v666_v31, 0.0  ;;  %v722_v43 = vsel %vm463_vm1, %v714_v39, 0.0  ;;  %v755_v47 = vmul.f32 %v715_v38, %v2222_v32  ;;  %v2323_v38 = vld [vmem:[%s2149_s14 + $0x28] sm:$0xff] }
  0x57   : > { %v762_v44 = vsel %vm463_vm1, %v754_v41, 0.0  ;;  %v470_v48 = vsel %vm463_vm1, %v457_v45, 0.0  ;;  %v473_v51 = vsel %vm463_vm1, %v458_v49, 0.0  ;;  %v498_v55 = vmul.f32 %v457_v45, %v2239_v42 }
  0x58   : > { %v765_v50 = vsel %vm463_vm1, %v755_v47, 0.0  ;;  %v578_v58 = vmul.f32 %v2258_v53, %v2258_v53  ;;  %v499_v59 = vmul.f32 %v458_v49, %v2246_v46  ;;  %v593_v1 = vsel %vm463_vm1, %v579_v61, 0.0  ;;  %v2334_v47 = vld [vmem:[%s2156_s15 + $0x20] sm:$0xff] }
  0x59   : > { %v510_v57 = vsel %vm463_vm1, %v498_v55, 0.0  ;;  %v628_v2 = vmul.f32 %v2204_v21, %v2273_v62  ;;  %v627_v6 = vmul.f32 %v2204_v21, %v2276_v63  ;;  %v716_v14 = vmul.f32 %v2225_v34, %v2287_v10 }
  0x5a   : > { %v590_v60 = vsel %vm463_vm1, %v578_v58, 0.0  ;;  %v513_v0 = vsel %vm463_vm1, %v499_v59, 0.0  ;;  %v717_v18 = vmul.f32 %v2225_v34, %v2294_v15  ;;  %v459_v28 = vmul.f32 %v2170_v3, %v2304_v24 }
  0x5b   : > { %v642_v7 = vsel %vm463_vm1, %v628_v2, 0.0  ;;  %v667_v9 = vmul.f32 %v627_v6, %v2276_v63  ;;  %v639_v11 = vsel %vm463_vm1, %v627_v6, 0.0  ;;  %v580_v45 = vmul.f32 %v2316_v33, %v2316_v33 }
  0x5c   : > { %468 = vadd.xlane.f32.xlu0 %v467_v16  ;;  %v668_v16 = vmul.f32 %v628_v2, %v2273_v62  ;;  %v731_v22 = vsel %vm463_vm1, %v717_v18, 0.0  ;;  %v476_v31 = vsel %vm463_vm1, %v459_v28, 0.0  ;;  %v2359_v2 = vld [vmem:[%s2159_s20 + $0x28] sm:$0xff] }
  0x5d   : > { %588 = vadd.xlane.f32.xlu1 %v587_v23  ;;  %v679_v13 = vsel %vm463_vm1, %v667_v9, 0.0  ;;  %v757_v23 = vmul.f32 %v717_v18, %v2294_v15  ;;  %v596_v49 = vsel %vm463_vm1, %v580_v45, 0.0  ;;  %v2369_v18 = vld [vmem:[%s2141_s19 + $0x38] sm:$0xff] }
  0x5e   : > { %508 = vadd.xlane.f32.xlu2 %v507_v17  ;;  %v728_v17 = vsel %vm463_vm1, %v716_v14, 0.0  ;;  %v682_v20 = vsel %vm463_vm1, %v668_v16, 0.0 }
  0x64   : > { %585 = vadd.xlane.f32.xlu0 %v584_v26  ;;  %v756_v26 = vmul.f32 %v716_v14, %v2287_v10 }
  0x65   : > { %674 = vadd.xlane.f32.xlu1 %v673_v30  ;;  %v2312_v30 = vld [vmem:[%s2141_s19 + $0x28] sm:$0xff] }
  0x66   : > { %634 = vadd.xlane.f32.xlu2 %v633_v27  ;;  %v771_v27 = vsel %vm463_vm1, %v757_v23, 0.0  ;;  %v768_v29 = vsel %vm463_vm1, %v756_v26, 0.0  ;;  %v2373_v23 = vld [vmem:[%s2141_s19 + $0x30] sm:$0xff] }
  0x6c   : > { %637 = vadd.xlane.f32.xlu0 %v636_v36  ;;  %v460_v36 = vmul.f32 %v2170_v3, %v2312_v30 }
  0x6d   : > { %726 = vadd.xlane.f32.xlu1 %v725_v40  ;;  %v559_v40 = vsel %vm463_vm1, %v2323_v38, 0.0 }
  0x6e   : > { %677 = vadd.xlane.f32.xlu2 %v676_v37  ;;  %v556_v37 = vsel %vm463_vm1, %v2316_v33, 0.0  ;;  %v479_v39 = vsel %vm463_vm1, %v460_v36, 0.0  ;;  %v501_v41 = vmul.f32 %v460_v36, %v2312_v30 }
  0x74   : > { %723 = vadd.xlane.f32.xlu0 %v722_v43  ;;  %v500_v43 = vmul.f32 %v459_v28, %v2304_v24 }
  0x75   : > { %471 = vadd.xlane.f32.xlu1 %v470_v48 }
  0x76   : > { %763 = vadd.xlane.f32.xlu2 %v762_v44  ;;  %v519_v44 = vsel %vm463_vm1, %v501_v41, 0.0  ;;  %v516_v48 = vsel %vm463_vm1, %v500_v43, 0.0 }
  0x7c   : > { %766 = vadd.xlane.f32.xlu0 %v765_v50  ;;  %v629_v50 = vmul.f32 %v2204_v21, %v2334_v47 }
  0x7d   : > { %554 = vadd.xlane.f32.xlu1 %v553_v54  ;;  %v581_v54 = vmul.f32 %v2323_v38, %v2323_v38 }
  0x7e   : > { %474 = vadd.xlane.f32.xlu2 %v473_v51  ;;  %v2341_v51 = vld [vmem:[%s2156_s15 + $0x28] sm:$0xff]  ;;  %v645_v55 = vsel %vm463_vm1, %v629_v50, 0.0  ;;  %v669_v61 = vmul.f32 %v629_v50, %v2334_v47 }
  0x80   : > { %v685_v6 = vsel %vm463_vm1, %v669_v61, 0.0 }
  0x84   : > { %551 = vadd.xlane.f32.xlu0 %v550_v56  ;;  %v630_v56 = vmul.f32 %v2204_v21, %v2341_v51 }
  0x85   : > { %591 = vadd.xlane.f32.xlu1 %v590_v60  ;;  %v2352_v60 = vld [vmem:[%s2159_s20 + $0x20] sm:$0xff] }
  0x86   : > { %511 = vadd.xlane.f32.xlu2 %v510_v57  ;;  %v599_v57 = vsel %vm463_vm1, %v581_v54, 0.0  ;;  %v648_v58 = vsel %vm463_vm1, %v630_v56, 0.0  ;;  %v670_v59 = vmul.f32 %v630_v56, %v2341_v51 }
  0x8c   : > { %514 = vadd.xlane.f32.xlu0 %v513_v0  ;;  %v688_v0 = vsel %vm463_vm1, %v670_v59, 0.0 }
  0x8d   : > { %643 = vadd.xlane.f32.xlu1 %v642_v7 }
  0x8e   : > { %594 = vadd.xlane.f32.xlu2 %v593_v1  ;;  %v718_v1 = vmul.f32 %v2225_v34, %v2352_v60 }
  0x90   : > { %v734_v7 = vsel %vm463_vm1, %v718_v1, 0.0  ;;  %v758_v9 = vmul.f32 %v718_v1, %v2352_v60 }
  0x92   : > { %v774_v16 = vsel %vm463_vm1, %v758_v9, 0.0 }
  0x94   : > { %640 = vadd.xlane.f32.xlu0 %v639_v11  ;;  %v719_v11 = vmul.f32 %v2225_v34, %v2359_v2 }
  0x95   : > { %729 = vadd.xlane.f32.xlu1 %v728_v17 }
  0x96   : > { %680 = vadd.xlane.f32.xlu2 %v679_v13  ;;  %v759_v17 = vmul.f32 %v719_v11, %v2359_v2 }
  0x98   : > { %v777_v26 = vsel %vm463_vm1, %v759_v17, 0.0 }
  0x9c   : > { %683 = vadd.xlane.f32.xlu0 %v682_v20 }
  0x9d   : > { %772 = vadd.xlane.f32.xlu1 %v771_v27  ;;  %v462_v27 = vmul.f32 %v2170_v3, %v2369_v18 }
  0x9e   : > { %732 = vadd.xlane.f32.xlu2 %v731_v22  ;;  %v737_v22 = vsel %vm463_vm1, %v719_v11, 0.0 }
  0x9f   : > { %v485_v36 = vsel %vm463_vm1, %v462_v27, 0.0 }
  0xa4   : > { %769 = vadd.xlane.f32.xlu0 %v768_v29  ;;  %v461_v29 = vmul.f32 %v2170_v3, %v2373_v23  ;;  %v2393_v3 = vld [vmem:[%s2149_s14 + $0x38] sm:$0xff] }
  0xa5   : > { %557 = vadd.xlane.f32.xlu1 %v556_v37  ;;  %v2382_v37 = vld [vmem:[%s2149_s14 + $0x30] sm:$0xff]  ;;  %v565_v54 = vsel %vm463_vm1, %v2393_v3, 0.0  ;;  %v583_v56 = vmul.f32 %v2393_v3, %v2393_v3  ;;  %s1526_s14 = sshll.u32 %s1913_s24, 3 }
  0xa6   : > { %477 = vadd.xlane.f32.xlu2 %v476_v31  ;;  %v562_v41 = vsel %vm463_vm1, %v2382_v37, 0.0  ;;  %v502_v43 = vmul.f32 %v461_v29, %v2373_v23  ;;  %v582_v59 = vmul.f32 %v2382_v37, %v2382_v37 }
  0xa8   : > { %v602_v9 = vsel %vm463_vm1, %v582_v59, 0.0 }
  0xac   : > { %480 = vadd.xlane.f32.xlu0 %v479_v39 }
  0xad   : > { %520 = vadd.xlane.f32.xlu1 %v519_v44 }
  0xae   : > { %560 = vadd.xlane.f32.xlu2 %v559_v40  ;;  %v482_v40 = vsel %vm463_vm1, %v461_v29, 0.0  ;;  %v1531_v29 = vld [vmem:[%s2628_s4 + $0x8] sm:$0xff] }
  0xaf   : > { %1045 = vmatpush.bf16.msra.mxu1 %v1531_v29 }
  0xb4   : > { %517 = vadd.xlane.f32.xlu0 %v516_v48  ;;  %v522_v48 = vsel %vm463_vm1, %v502_v43, 0.0 }
  0xb5   : > { %646 = vadd.xlane.f32.xlu1 %v645_v55 }
  0xb6   : > { %597 = vadd.xlane.f32.xlu2 %v596_v49  ;;  %v503_v49 = vmul.f32 %v462_v27, %v2369_v18  ;;  %v1533_v27 = vld [vmem:[%s2628_s4 + $0x18] sm:$0xff] }
  0xb7   : > { %992 = vmatpush.bf16.msra.mxu0 %v1533_v27 }
  0xb8   : > { %v525_v55 = vsel %vm463_vm1, %v503_v49, 0.0 }
  0xbc   : > { %600 = vadd.xlane.f32.xlu0 %v599_v57  ;;  %v2403_v57 = vld [vmem:[%s2156_s15 + $0x30] sm:$0xff] }
  0xbd   : > { %689 = vadd.xlane.f32.xlu1 %v688_v0  ;;  %v605_v0 = vsel %vm463_vm1, %v583_v56, 0.0  ;;  %v631_v1 = vmul.f32 %v2204_v21, %v2403_v57  ;;  %v2433_v56 = vld [vmem:[%s2159_s20 + $0x38] sm:$0xff] }
  0xbe   : > { %649 = vadd.xlane.f32.xlu2 %v648_v58 }
  0xbf   : > { %v651_v11 = vsel %vm463_vm1, %v631_v1, 0.0 }
  0xc0   : > { %v546_v13 = vpop.xlane.xlu1 %545 }
  0xc4   : > { %686 = vadd.xlane.f32.xlu0 %v685_v6  ;;  %v2411_v6 = vld [vmem:[%s2156_s15 + $0x38] sm:$0xff]  ;;  %s1270_s15 = sadd.s32 %s1539_s7, %s1526_s14 }
  0xc5   : > { %775 = vadd.xlane.f32.xlu1 %v774_v16  ;;  %v671_v16 = vmul.f32 %v631_v1, %v2403_v57  ;;  %v632_v17 = vmul.f32 %v2204_v21, %v2411_v6  ;;  %v1536_v1 = vld [vmem:[%s2628_s4 + $0x30] sm:$0xff]  ;;  %s1527_s5 = sshll.u32 %s1270_s15, 3 }
  0xc6   : > { %735 = vadd.xlane.f32.xlu2 %v734_v7  ;;  %s1272_s12 = scalar_lea.hbm %s2630_s6, %s1527_s5 }
  0xc7   : > { %v466_v14 = vpop.xlane.xlu0 %465  ;;  %v691_v43 = vsel %vm463_vm1, %v671_v16, 0.0  ;;  %s1275_s23 = sshll.u32 %s1272_s12, 4  ;;  %s1276_s23 = int_to_ptr.hbm [resolvable:$true] %s1275_s23 }
  0xc8   : > { %v549_v28 = vpop.xlane.xlu1 %548  ;;  %s1833_s26 = sshra.s32 %s1276_s23, 4  ;;  %s1834_s26 = int_to_ptr.hbm [resolvable:$true] %s1833_s26 }
  0xc9   : > { %v506_v20 = vpop.xlane.xlu2 %505  ;;  %s1835_s16 = scalar_lea.hbm %s1834_s26, 64  ;;  %p1840_p10 = scmp.lt.s32.totalorder %s1834_s26, %s2630_s6 }
  0xca   : > { %p1836_p3 = scmp.ne.s32.totalorder %s1834_s26, %s1835_s16  ;;  %p1841_p11 = scmp.lt.s32.totalorder %s1839_s27, %s1835_s16 }
  0xcc   : > { %738 = vadd.xlane.f32.xlu0 %v737_v22  ;;  %v568_v22 = vadd.f32 %v546_v13, %v466_v14  ;;  %v1537_v13 = vld [vmem:[%s2628_s4 + $0x38] sm:$0xff]  ;;  %p1837_p6 = pnand %p1836_p3, %p2046_p9  ;;  %p1842_p12 = por %p1841_p11, %p1840_p10 }
  0xcd   : > { %486 = vadd.xlane.f32.xlu1 %v485_v36  ;;  %v1535_v36 = vld [vmem:[%s2628_s4 + $0x28] sm:$0xff]  ;;  %1207 = vmatpush.bf16.msra.mxu3 %v1537_v13 }
  0xce   : > { %778 = vadd.xlane.f32.xlu2 %v777_v26  ;;  %1122 = vmatpush.bf16.msra.mxu2 %v1535_v36  ;;  %p1838_p8 = pneg %p1837_p6 }
  0xcf   : > { %v469_v31 = vpop.xlane.xlu0 %468 }
  0xd0   : > { %v2390_v44 = vpop.xlane.xlu1 %588  ;;  %p1843_p0 = pnand %p1842_p12, %p1838_p8 }
  0xd1   : > { %v2384_v39 = vpop.xlane.xlu2 %508  ;;  %1208 = vmatpush.bf16.msra.mxu3 %v1536_v1 }
  0xd4   : > { %483 = vadd.xlane.f32.xlu0 %v482_v40  ;;  %v569_v40 = vadd.f32 %v549_v28, %v469_v31  ;;  %v2436_v28 = vld [vmem:[%s2159_s20 + $0x30] sm:$0xff]  ;;  %v654_v31 = vsel %vm463_vm1, %v632_v17, 0.0 }
  0xd5   : > { %523 = vadd.xlane.f32.xlu1 %v522_v48  ;;  %v672_v48 = vmul.f32 %v632_v17, %v2411_v6  ;;  %v720_v16 = vmul.f32 %v2225_v34, %v2436_v28  ;;  %v609_v17 = vadd.f32 %v2390_v44, %v2384_v39 }
  0xd6   : > { %563 = vadd.xlane.f32.xlu2 %v562_v41 }
  0xd7   : > { %v586_v45 = vpop.xlane.xlu0 %585 }
  0xd8   : > { %v675_v58 = vpop.xlane.xlu1 %674  ;;  %v608_v41 = vadd.f32 %v586_v45, %v506_v20  ;;  %v1532_v45 = vld [vmem:[%s2628_s4 + $0x10] sm:$0xff] }
  0xd9   : > { %v635_v50 = vpop.xlane.xlu2 %634  ;;  %993 = vmatpush.bf16.msra.mxu0 %v1532_v45 }
  0xda   : > { %v657_v21 = vadd.f32 %v635_v50, %v568_v22  ;;  %v697_v49 = vadd.f32 %v675_v58, %v608_v41  ;;  %v1530_v50 = vld [vmem:[%s2628_s4] sm:$0xff] }
  0xdb   : > { %v1534_v58 = vld [vmem:[%s2628_s4 + $0x20] sm:$0xff]  ;;  %1046 = vmatpush.bf16.msra.mxu1 %v1530_v50 }
  0xdc   : > { %566 = vadd.xlane.f32.xlu0 %v565_v54  ;;  %1123 = vmatpush.bf16.msra.mxu2 %v1534_v58 }
  0xdd   : > { %606 = vadd.xlane.f32.xlu1 %v605_v0 }
  0xde   : > { %526 = vadd.xlane.f32.xlu2 %v525_v55 }
  0xdf   : > { %v638_v61 = vpop.xlane.xlu0 %637 }
  0xe0   : > { %v727_v26 = vpop.xlane.xlu1 %726  ;;  %v658_v54 = vadd.f32 %v638_v61, %v569_v40 }
  0xe1   : > { %v678_v7 = vpop.xlane.xlu2 %677 }
  0xe2   : > { %v747_v59 = vadd.f32 %v727_v26, %v658_v54  ;;  %v698_v29 = vadd.f32 %v678_v7, %v609_v17 }
  0xe4   : > { %603 = vadd.xlane.f32.xlu0 %v602_v9  ;;  %v694_v9 = vsel %vm463_vm1, %v672_v48, 0.0  ;;  %v2464_v36 = vmul.f32 0.0078125, %v747_v59 }
  0xe5   : > { %692 = vadd.xlane.f32.xlu1 %v691_v43 }
  0xe6   : > { %652 = vadd.xlane.f32.xlu2 %v651_v11  ;;  %v721_v11 = vmul.f32 %v2225_v34, %v2433_v56  ;;  %v811_v43 = vmul.f32 %v2464_v36, %v2464_v36 }
  0xe7   : > { %v724_v14 = vpop.xlane.xlu0 %723 }
  0xe8   : > { %v746_v55 = vadd.f32 %v724_v14, %v657_v21  ;;  %v2462_v27 = vpop.xlane.xlu1 %471  ;;  %v743_v41 = vsel %vm463_vm1, %v721_v11, 0.0  ;;  %v760_v21 = vmul.f32 %v720_v16, %v2436_v28  ;;  %v740_v14 = vsel %vm463_vm1, %v720_v16, 0.0 }
  0xe9   : > { %v764_v20 = vpop.xlane.xlu2 %763 }
  0xea   : > { %v2448_v61 = vmul.f32 0.0078125, %v746_v55  ;;  %v786_v0 = vadd.f32 %v764_v20, %v697_v49  ;;  %v780_v48 = vsel %vm463_vm1, %v760_v21, 0.0  ;;  %v761_v55 = vmul.f32 %v721_v11, %v2433_v56 }
  0xec   : > { %v802_v22 = vmul.f32 0.0078125, %v786_v0  ;;  %v810_v26 = vmul.f32 %v2448_v61, %v2448_v61  ;;  %655 = vadd.xlane.f32.xlu0 %v654_v31  ;;  %v783_v59 = vsel %vm463_vm1, %v761_v55, 0.0  ;;  %v1068_v55 = vsub.f32 %v2201_v19, %v2448_v61 }
  0xed   : > { %744 = vadd.xlane.f32.xlu1 %v743_v41 }
  0xee   : > { %v818_v40 = vsub.f32 %v802_v22, %v810_v26  ;;  %695 = vadd.xlane.f32.xlu2 %v694_v9 }
  0xef   : > { %v767_v34 = vpop.xlane.xlu0 %766 }
  0xf0   : > { %v826_v39 = vadd.f32 1e-05, %v818_v40  ;;  %v787_v44 = vadd.f32 %v767_v34, %v698_v29  ;;  %v555_v54 = vpop.xlane.xlu1 %554 }
  0xf1   : > { %v2468_v13 = vpop.xlane.xlu2 %474 }
  0xf2   : > { %1653 = vrsqrt.f32 %v826_v39  ;;  %v803_v7 = vmul.f32 0.0078125, %v787_v44  ;;  %vm840_vm3 = vweird.f32 %v826_v39 }
  0xf4   : > { %v819_v49 = vsub.f32 %v803_v7, %v811_v43  ;;  %741 = vadd.xlane.f32.xlu0 %v740_v14  ;;  %v939_v14 = vsub.f32 %v2190_v12, %v2464_v36  ;;  %v1154_v12 = vsub.f32 %v2222_v32, %v2464_v36  ;;  %v571_v32 = vadd.f32 %v555_v54, %v2468_v13 }
  0xf6   : > { %v827_v20 = vadd.f32 1e-05, %v819_v49  ;;  %781 = vadd.xlane.f32.xlu2 %v780_v48  ;;  %v938_v48 = vsub.f32 %v2173_v4, %v2448_v61  ;;  %v914_v49 = vsub.f32 %v2176_v5, %v2448_v61  ;;  %v1153_v5 = vsub.f32 %v2228_v35, %v2448_v61 }
  0xf7   : > { %v552_v31 = vpop.xlane.xlu0 %551 }
  0xf8   : > { %v1654_v45 = vpop.eup %1653  ;;  %1655 = vrsqrt.f32 %v827_v20  ;;  %v592_v9 = vpop.xlane.xlu1 %591  ;;  %vm850_vm6 = vweird.f32 %v827_v20 }
  0xf9   : > { %v835_v50 = vmul.f32 %v1654_v45, %v826_v39  ;;  %v512_v58 = vpop.xlane.xlu2 %511  ;;  %vm841_vm2 = vweird.f32 %v1654_v45  ;;  %v915_v39 = vsub.f32 %v2183_v8, %v2464_v36 }
  0xfa   : > { %vm842_vm4 = vmor %vm840_vm3, %vm841_vm2 }
  0xfb   : > { %v836_v0 = vmul.f32 %v1654_v45, %v835_v50 }
  0xfc   : > { %784 = vadd.xlane.f32.xlu0 %v783_v59 }
  0xfd   : > { %v837_v1 = vmul.f32 0.5, %v836_v0 }
  0xfe   : > { %v1656_v16 = vpop.eup %1655 }
  0xff   : > { %v838_v17 = vsub.f32 1.5, %v837_v1  ;;  %v845_v22 = vmul.f32 %v1656_v16, %v827_v20  ;;  %v515_v26 = vpop.xlane.xlu0 %514  ;;  %vm851_vm5 = vweird.f32 %v1656_v16 }
 0x100   : > { %v644_v21 = vpop.xlane.xlu1 %643  ;;  %vm852_vm7 = vmor %vm850_vm6, %vm851_vm5 }
 0x101   : > { %v846_v29 = vmul.f32 %v1656_v16, %v845_v22  ;;  %v595_v40 = vpop.xlane.xlu2 %594  ;;  %v839_v11 = vmul.f32 %v1654_v45, %v838_v17  ;;  %v660_v61 = vadd.f32 %v644_v21, %v571_v32 }
 0x103   : > { %v847_v34 = vmul.f32 0.5, %v846_v29  ;;  %v843_v44 = vsel %vm842_vm4, %v1654_v45, %v839_v11  ;;  %v1069_v45 = vsub.f32 %v2212_v25, %v2464_v36  ;;  %v570_v36 = vadd.f32 %v552_v31, %v2462_v27 }
 0x104   : > { %v946_v59 = vmul.f32 %v938_v48, %v843_v44  ;;  %v922_v4 = vmul.f32 %v914_v49, %v843_v44  ;;  %v1076_v17 = vmul.f32 %v1068_v55, %v843_v44  ;;  %v1161_v22 = vmul.f32 %v1153_v5, %v843_v44 }
 0x105   : > { %v848_v41 = vsub.f32 1.5, %v847_v34  ;;  %v610_v49 = vadd.f32 %v592_v9, %v512_v58 }
 0x107   : > { %v849_v43 = vmul.f32 %v1656_v16, %v848_v41  ;;  %v641_v7 = vpop.xlane.xlu0 %640 }
 0x108   : > { %v730_v25 = vpop.xlane.xlu1 %729 }
 0x109   : > { %v681_v20 = vpop.xlane.xlu2 %680  ;;  %v853_v50 = vsel %vm852_vm7, %v1656_v16, %v849_v43  ;;  %v659_v16 = vadd.f32 %v641_v7, %v570_v36 }
 0x10a   : > { %v947_v0 = vmul.f32 %v939_v14, %v853_v50  ;;  %v923_v1 = vmul.f32 %v915_v39, %v853_v50  ;;  %v1077_v8 = vmul.f32 %v1069_v45, %v853_v50  ;;  %v1162_v29 = vmul.f32 %v1154_v12, %v853_v50 }
 0x10b   : > { %v611_v14 = vadd.f32 %v595_v40, %v515_v26  ;;  %v748_v43 = vadd.f32 %v730_v25, %v659_v16  ;;  %v699_v54 = vadd.f32 %v681_v20, %v610_v49 }
 0x10c   : > { %v954_v19 = vpack.c.bf16 %v947_v0, %v946_v59  ;;  %v930_v11 = vpack.c.bf16 %v923_v1, %v922_v4  ;;  %v1084_v34 = vpack.c.bf16 %v1077_v8, %v1076_v17  ;;  %v1169_v41 = vpack.c.bf16 %v1162_v29, %v1161_v22 }
 0x10d   : > { %v796_v31 = vmul.f32 0.0078125, %v748_v43 }
 0x10e   : > { %1485 = vmatmul.msk.bf16.vlgmr.msra.gmra.mxu0 %vm463_vm1, %v954_v19  ;;  %1497 = vmatmul.msk.bf16.vlgmr.msra.gmra.mxu1 %vm463_vm1, %v930_v11 }
 0x10f   : > { %1509 = vmatmul.msk.bf16.vlgmr.msra.gmra.mxu2 %vm463_vm1, %v1084_v34  ;;  %1521 = vmatmul.msk.bf16.vlgmr.msra.gmra.mxu3 %vm463_vm1, %v1169_v41  ;;  %v684_v35 = vpop.xlane.xlu0 %683  ;;  %v812_v4 = vmul.f32 %v796_v31, %v796_v31 }
 0x110   : > { %v700_v39 = vadd.f32 %v684_v35, %v611_v14  ;;  %v773_v27 = vpop.xlane.xlu1 %772 }
 0x111   : > { %v733_v44 = vpop.xlane.xlu2 %732 }
 0x112   : > { %v749_v48 = vadd.f32 %v733_v44, %v660_v61  ;;  %v789_v55 = vadd.f32 %v773_v27, %v700_v39  ;;  %v940_v44 = vsub.f32 %v2258_v53, %v796_v31  ;;  %v916_v27 = vsub.f32 %v2239_v42, %v796_v31 }
 0x113   : > { %v1155_v53 = vsub.f32 %v2287_v10, %v796_v31 }
 0x114   : > { %v2498_v13 = vmul.f32 0.0078125, %v749_v48  ;;  %v805_v12 = vmul.f32 0.0078125, %v789_v55 }
 0x116   : > { %v813_v50 = vmul.f32 %v2498_v13, %v2498_v13  ;;  %v941_v14 = vsub.f32 %v2255_v52, %v2498_v13  ;;  %v917_v39 = vsub.f32 %v2246_v46, %v2498_v13  ;;  %v1071_v55 = vsub.f32 %v2273_v62, %v2498_v13 }
 0x117   : > { %v770_v45 = vpop.xlane.xlu0 %769 }
 0x118   : > { %v788_v59 = vadd.f32 %v770_v45, %v699_v54  ;;  %v821_v7 = vsub.f32 %v805_v12, %v813_v50  ;;  %v558_v58 = vpop.xlane.xlu1 %557  ;;  %v1070_v54 = vsub.f32 %v2276_v63, %v796_v31 }
 0x119   : > { %v478_v21 = vpop.xlane.xlu2 %477 }
 0x11a   : > { %v804_v26 = vmul.f32 0.0078125, %v788_v59  ;;  %v829_v40 = vadd.f32 1e-05, %v821_v7  ;;  %v1156_v59 = vsub.f32 %v2294_v15, %v2498_v13 }
 0x11c   : > { %v820_v5 = vsub.f32 %v804_v26, %v812_v4  ;;  %1657 = vrsqrt.f32 %v829_v40  ;;  %vm870_vm9 = vweird.f32 %v829_v40 }
 0x11e   : > { %v828_v9 = vadd.f32 1e-05, %v820_v5 }
 0x11f   : > { %v481_v0 = vpop.xlane.xlu0 %480 }
 0x120   : > { %1659 = vrsqrt.f32 %v828_v9  ;;  %v521_v8 = vpop.xlane.xlu1 %520  ;;  %vm860_vm12 = vweird.f32 %v828_v9 }
 0x121   : > { %v561_v20 = vpop.xlane.xlu2 %560 }
 0x122   : > { %v1658_v1 = vpop.eup %1657 }
 0x123   : > { %v865_v17 = vmul.f32 %v1658_v1, %v829_v40  ;;  %vm871_vm8 = vweird.f32 %v1658_v1 }
 0x124   : > { %vm872_vm11 = vmor %vm870_vm9, %vm871_vm8 }
 0x125   : > { %v866_v29 = vmul.f32 %v1658_v1, %v865_v17  ;;  %v572_v17 = vadd.f32 %v558_v58, %v478_v21 }
 0x126   : > { %v1660_v22 = vpop.eup %1659 }
 0x127   : > { %v855_v19 = vmul.f32 %v1660_v22, %v828_v9  ;;  %v518_v11 = vpop.xlane.xlu0 %517  ;;  %v867_v34 = vmul.f32 0.5, %v866_v29  ;;  %vm861_vm10 = vweird.f32 %v1660_v22  ;;  %v573_v29 = vadd.f32 %v561_v20, %v481_v0 }
 0x128   : > { %v647_v16 = vpop.xlane.xlu1 %646  ;;  %vm862_vm13 = vmor %vm860_vm12, %vm861_vm10 }
 0x129   : > { %v856_v25 = vmul.f32 %v1660_v22, %v855_v19  ;;  %v598_v41 = vpop.xlane.xlu2 %597  ;;  %v868_v32 = vsub.f32 1.5, %v867_v34  ;;  %v661_v15 = vadd.f32 %v647_v16, %v572_v17 }
 0x12a   : > { %v612_v31 = vadd.f32 %v598_v41, %v518_v11 }
 0x12b   : > { %v857_v36 = vmul.f32 0.5, %v856_v25  ;;  %v869_v35 = vmul.f32 %v1658_v1, %v868_v32 }
 0x12d   : > { %v858_v61 = vsub.f32 1.5, %v857_v36  ;;  %v873_v49 = vsel %vm872_vm11, %v1658_v1, %v869_v35 }
 0x12e   : > { %v949_v52 = vmul.f32 %v941_v14, %v873_v49  ;;  %v925_v50 = vmul.f32 %v917_v39, %v873_v49  ;;  %v1079_v26 = vmul.f32 %v1071_v55, %v873_v49  ;;  %v1164_v42 = vmul.f32 %v1156_v59, %v873_v49 }
 0x12f   : > { %v859_v43 = vmul.f32 %v1660_v22, %v858_v61  ;;  %v601_v48 = vpop.xlane.xlu0 %600 }
 0x130   : > { %v690_v1 = vpop.xlane.xlu1 %689  ;;  %v613_v32 = vadd.f32 %v601_v48, %v521_v8 }
 0x131   : > { %v650_v45 = vpop.xlane.xlu2 %649  ;;  %v863_v12 = vsel %vm862_vm13, %v1660_v22, %v859_v43 }
 0x132   : > { %v948_v7 = vmul.f32 %v940_v44, %v863_v12  ;;  %v924_v4 = vmul.f32 %v916_v27, %v863_v12  ;;  %v1078_v46 = vmul.f32 %v1070_v54, %v863_v12  ;;  %v1163_v40 = vmul.f32 %v1155_v53, %v863_v12 }
 0x133   : > { %v662_v21 = vadd.f32 %v650_v45, %v573_v29  ;;  %v702_v35 = vadd.f32 %v690_v1, %v613_v32 }
 0x134   : > { %v955_v5 = vpack.c.bf16 %v949_v52, %v948_v7  ;;  %v931_v63 = vpack.c.bf16 %v925_v50, %v924_v4  ;;  %v1085_v9 = vpack.c.bf16 %v1079_v26, %v1078_v46  ;;  %v1170_v62 = vpack.c.bf16 %v1164_v42, %v1163_v40 }
 0x136   : > { %1486 = vmatmul.msk.bf16.gmra.mxu0 %vm463_vm1, %v955_v5  ;;  %1498 = vmatmul.msk.bf16.gmra.mxu1 %vm463_vm1, %v931_v63 }
 0x137   : > { %1510 = vmatmul.msk.bf16.gmra.mxu2 %vm463_vm1, %v1085_v9  ;;  %1522 = vmatmul.msk.bf16.gmra.mxu3 %vm463_vm1, %v1170_v62  ;;  %v687_v10 = vpop.xlane.xlu0 %686 }
 0x138   : > { %v701_v19 = vadd.f32 %v687_v10, %v612_v31  ;;  %v776_v25 = vpop.xlane.xlu1 %775 }
 0x139   : > { %v736_v13 = vpop.xlane.xlu2 %735 }
 0x13a   : > { %v750_v22 = vadd.f32 %v736_v13, %v661_v15  ;;  %v790_v58 = vadd.f32 %v776_v25, %v701_v19 }
 0x13c   : > { %v2518_v34 = vmul.f32 0.0078125, %v750_v22  ;;  %v806_v61 = vmul.f32 0.0078125, %v790_v58 }
 0x13e   : > { %v814_v44 = vmul.f32 %v2518_v34, %v2518_v34  ;;  %v942_v62 = vsub.f32 %v2316_v33, %v2518_v34  ;;  %v918_v17 = vsub.f32 %v2304_v24, %v2518_v34  ;;  %v1072_v13 = vsub.f32 %v2334_v47, %v2518_v34 }
 0x13f   : > { %v739_v36 = vpop.xlane.xlu0 %738  ;;  %v1157_v31 = vsub.f32 %v2352_v60, %v2518_v34 }
 0x140   : > { %v751_v14 = vadd.f32 %v739_v36, %v662_v21  ;;  %v822_v16 = vsub.f32 %v806_v61, %v814_v44  ;;  %v487_v39 = vpop.xlane.xlu1 %486 }
 0x141   : > { %v779_v43 = vpop.xlane.xlu2 %778 }
 0x142   : > { %v799_v49 = vmul.f32 0.0078125, %v751_v14  ;;  %v791_v11 = vadd.f32 %v779_v43, %v702_v35  ;;  %v830_v41 = vadd.f32 1e-05, %v822_v16 }
 0x144   : > { %v807_v0 = vmul.f32 0.0078125, %v791_v11  ;;  %v815_v20 = vmul.f32 %v799_v49, %v799_v49  ;;  %1661 = vrsqrt.f32 %v830_v41  ;;  %vm880_vm15 = vweird.f32 %v830_v41 }
 0x145   : > { %v943_v22 = vsub.f32 %v2323_v38, %v799_v49  ;;  %v919_v29 = vsub.f32 %v2312_v30, %v799_v49  ;;  %v1073_v19 = vsub.f32 %v2341_v51, %v799_v49  ;;  %v1158_v33 = vsub.f32 %v2359_v2, %v799_v49 }
 0x146   : > { %v823_v27 = vsub.f32 %v807_v0, %v815_v20 }
 0x147   : > { %v484_v8 = vpop.xlane.xlu0 %483 }
 0x148   : > { %v831_v48 = vadd.f32 1e-05, %v823_v27  ;;  %v524_v45 = vpop.xlane.xlu1 %523 }
 0x149   : > { %v564_v54 = vpop.xlane.xlu2 %563 }
 0x14a   : > { %1663 = vrsqrt.f32 %v831_v48  ;;  %v1662_v55 = vpop.eup %1661  ;;  %vm890_vm3 = vweird.f32 %v831_v48  ;;  %v574_v51 = vadd.f32 %v564_v54, %v484_v8 }
 0x14b   : > { %v875_v53 = vmul.f32 %v1662_v55, %v830_v41  ;;  %vm881_vm14 = vweird.f32 %v1662_v55 }
 0x14c   : > { %vm882_vm0 = vmor %vm880_vm15, %vm881_vm14 }
 0x14d   : > { %v876_v12 = vmul.f32 %v1662_v55, %v875_v53 }
 0x14f   : > { %v567_v52 = vpop.xlane.xlu0 %566  ;;  %v877_v59 = vmul.f32 0.5, %v876_v12 }
 0x150   : > { %v1664_v50 = vpop.eup %1663  ;;  %v607_v5 = vpop.xlane.xlu1 %606  ;;  %v575_v2 = vadd.f32 %v567_v52, %v487_v39 }
 0x151   : > { %v885_v7 = vmul.f32 %v1664_v50, %v831_v48  ;;  %v527_v4 = vpop.xlane.xlu2 %526  ;;  %v878_v46 = vsub.f32 1.5, %v877_v59  ;;  %vm891_vm2 = vweird.f32 %v1664_v50 }
 0x152   : > { %vm892_vm4 = vmor %vm890_vm3, %vm891_vm2 }
 0x153   : > { %v886_v26 = vmul.f32 %v1664_v50, %v885_v7  ;;  %v879_v40 = vmul.f32 %v1662_v55, %v878_v46 }
 0x155   : > { %v887_v42 = vmul.f32 0.5, %v886_v26  ;;  %v883_v1 = vsel %vm882_vm0, %v1662_v55, %v879_v40 }
 0x156   : > { %v950_v24 = vmul.f32 %v942_v62, %v883_v1  ;;  %v926_v32 = vmul.f32 %v918_v17, %v883_v1  ;;  %v1080_v21 = vmul.f32 %v1072_v13, %v883_v1  ;;  %v1165_v44 = vmul.f32 %v1157_v31, %v883_v1 }
 0x157   : > { %v888_v63 = vsub.f32 1.5, %v887_v42  ;;  %v604_v9 = vpop.xlane.xlu0 %603 }
 0x158   : > { %v693_v61 = vpop.xlane.xlu1 %692  ;;  %v614_v16 = vadd.f32 %v604_v9, %v524_v45 }
 0x159   : > { %v889_v10 = vmul.f32 %v1664_v50, %v888_v63  ;;  %v653_v15 = vpop.xlane.xlu2 %652 }
 0x15a   : > { %v663_v49 = vadd.f32 %v653_v15, %v574_v51  ;;  %v703_v0 = vadd.f32 %v693_v61, %v614_v16  ;;  %v2550_v16 = vld [vmem:[#allocation10] ss:$0 sm:$0xff] }
 0x15b   : > { %v893_v25 = vsel %vm892_vm4, %v1664_v50, %v889_v10  ;;  %v615_v50 = vadd.f32 %v607_v5, %v527_v4 }
 0x15c   : > { %v951_v58 = vmul.f32 %v943_v22, %v893_v25  ;;  %v927_v36 = vmul.f32 %v919_v29, %v893_v25  ;;  %v1081_v35 = vmul.f32 %v1073_v19, %v893_v25  ;;  %v1166_v47 = vmul.f32 %v1158_v33, %v893_v25 }
 0x15e   : > { %v956_v60 = vpack.c.bf16 %v951_v58, %v950_v24  ;;  %v932_v34 = vpack.c.bf16 %v927_v36, %v926_v32  ;;  %v1086_v14 = vpack.c.bf16 %v1081_v35, %v1080_v21  ;;  %v1171_v43 = vpack.c.bf16 %v1166_v47, %v1165_v44 }
 0x15f   : > { %v656_v38 = vpop.xlane.xlu0 %655 }
 0x160   : > { %1487 = vmatmul.msk.bf16.gmra.mxu0 %vm463_vm1, %v956_v60  ;;  %1499 = vmatmul.msk.bf16.gmra.mxu1 %vm463_vm1, %v932_v34  ;;  %v745_v11 = vpop.xlane.xlu1 %744  ;;  %v664_v20 = vadd.f32 %v656_v38, %v575_v2 }
 0x161   : > { %1511 = vmatmul.msk.bf16.gmra.mxu2 %vm463_vm1, %v1086_v14  ;;  %1523 = vmatmul.msk.bf16.gmra.mxu3 %vm463_vm1, %v1171_v43  ;;  %v696_v30 = vpop.xlane.xlu2 %695 }
 0x162   : > { %v753_v55 = vadd.f32 %v745_v11, %v664_v20  ;;  %v704_v46 = vadd.f32 %v696_v30, %v615_v50 }
 0x164   : > { %v801_v26 = vmul.f32 0.0078125, %v753_v55 }
 0x166   : > { %v817_v54 = vmul.f32 %v801_v26, %v801_v26  ;;  %v945_v33 = vsub.f32 %v2393_v3, %v801_v26  ;;  %v921_v21 = vsub.f32 %v2369_v18, %v801_v26  ;;  %v1075_v58 = vsub.f32 %v2411_v6, %v801_v26 }
 0x167   : > { %v742_v41 = vpop.xlane.xlu0 %741  ;;  %v1160_v35 = vsub.f32 %v2433_v56, %v801_v26 }
 0x168   : > { %v752_v27 = vadd.f32 %v742_v41, %v663_v49 }
 0x169   : > { %v782_v48 = vpop.xlane.xlu2 %781 }
 0x16a   : > { %v800_v53 = vmul.f32 0.0078125, %v752_v27  ;;  %v792_v12 = vadd.f32 %v782_v48, %v703_v0 }
 0x16c   : > { %v808_v59 = vmul.f32 0.0078125, %v792_v12  ;;  %v816_v7 = vmul.f32 %v800_v53, %v800_v53  ;;  %v944_v19 = vsub.f32 %v2382_v37, %v800_v53  ;;  %v920_v24 = vsub.f32 %v2373_v23, %v800_v53 }
 0x16d   : > { %v1074_v32 = vsub.f32 %v2403_v57, %v800_v53  ;;  %v1159_v36 = vsub.f32 %v2436_v28, %v800_v53 }
 0x16e   : > { %v824_v40 = vsub.f32 %v808_v59, %v816_v7 }
 0x16f   : > { %v785_v42 = vpop.xlane.xlu0 %784 }
 0x170   : > { %v832_v8 = vadd.f32 1e-05, %v824_v40  ;;  %v793_v39 = vadd.f32 %v785_v42, %v704_v46 }
 0x172   : > { %1665 = vrsqrt.f32 %v832_v8  ;;  %v809_v45 = vmul.f32 0.0078125, %v793_v39  ;;  %vm900_vm6 = vweird.f32 %v832_v8 }
 0x174   : > { %v825_v52 = vsub.f32 %v809_v45, %v817_v54 }
 0x176   : > { %v833_v63 = vadd.f32 1e-05, %v825_v52 }
 0x178   : > { %v1666_v9 = vpop.eup %1665  ;;  %1667 = vrsqrt.f32 %v833_v63  ;;  %vm910_vm9 = vweird.f32 %v833_v63 }
 0x179   : > { %v895_v1 = vmul.f32 %v1666_v9, %v832_v8  ;;  %vm901_vm5 = vweird.f32 %v1666_v9 }
 0x17a   : > { %vm902_vm7 = vmor %vm900_vm6, %vm901_vm5 }
 0x17b   : > { %v896_v62 = vmul.f32 %v1666_v9, %v895_v1 }
 0x17d   : > { %v897_v17 = vmul.f32 0.5, %v896_v62 }
 0x17e   : > { %v1668_v10 = vpop.eup %1667 }
 0x17f   : > { %v898_v4 = vsub.f32 1.5, %v897_v17  ;;  %v905_v5 = vmul.f32 %v1668_v10, %v833_v63  ;;  %vm911_vm8 = vweird.f32 %v1668_v10 }
 0x180   : > { %vm912_vm10 = vmor %vm910_vm9, %vm911_vm8 }
 0x181   : > { %v906_v15 = vmul.f32 %v1668_v10, %v905_v5  ;;  %v899_v13 = vmul.f32 %v1666_v9, %v898_v4 }
 0x183   : > { %v907_v31 = vmul.f32 0.5, %v906_v15  ;;  %v903_v29 = vsel %vm902_vm7, %v1666_v9, %v899_v13 }
 0x184   : > { %v952_v61 = vmul.f32 %v944_v19, %v903_v29  ;;  %v928_v37 = vmul.f32 %v920_v24, %v903_v29  ;;  %v1082_v44 = vmul.f32 %v1074_v32, %v903_v29  ;;  %v1167_v23 = vmul.f32 %v1159_v36, %v903_v29 }
 0x185   : > { %v908_v22 = vsub.f32 1.5, %v907_v31 }
 0x187   : > { %v909_v25 = vmul.f32 %v1668_v10, %v908_v22 }
 0x189   : > { %v913_v47 = vsel %vm912_vm10, %v1668_v10, %v909_v25 }
 0x18a   : > { %v953_v3 = vmul.f32 %v945_v33, %v913_v47  ;;  %v929_v60 = vmul.f32 %v921_v21, %v913_v47  ;;  %v1083_v34 = vmul.f32 %v1075_v58, %v913_v47  ;;  %v1168_v14 = vmul.f32 %v1160_v35, %v913_v47 }
 0x18b   : > { %v995_v38 = vpop.f32.mrf.mxu0  ;;  %v1048_v57 = vpop.f32.mrf.mxu1 }
 0x18c   : > { %v957_v43 = vpack.c.bf16 %v953_v3, %v952_v61  ;;  %v933_v30 = vpack.c.bf16 %v929_v60, %v928_v37  ;;  %v1087_v18 = vpack.c.bf16 %v1083_v34, %v1082_v44  ;;  %v1172_v6 = vpack.c.bf16 %v1168_v14, %v1167_v23 }
 0x18d   : > { %v1049_v56 = vadd.f32 %v1048_v57, %v995_v38 }
 0x18e   : > { %1488 = vmatmul.msk.bf16.gmra.mxu0 %vm463_vm1, %v957_v43  ;;  %1500 = vmatmul.msk.bf16.gmra.mxu1 %vm463_vm1, %v933_v30 }
 0x18f   : > { %1512 = vmatmul.msk.bf16.gmra.mxu2 %vm463_vm1, %v1087_v18  ;;  %1524 = vmatmul.msk.bf16.gmra.mxu3 %vm463_vm1, %v1172_v6 }
 0x192   : > { %v1125_v28 = vpop.f32.mrf.mxu2  ;;  %v1210_v51 = vpop.f32.mrf.mxu3 }
 0x193   : > { %v1145_v2 = vadd.f32 %v1125_v28, %v1049_v56  ;;  %v997_v11 = vpop.f32.mrf.mxu0  ;;  %v1050_v41 = vpop.f32.mrf.mxu1 }
 0x194   : > { %v1051_v20 = vadd.f32 %v1050_v41, %v997_v11 }
 0x195   : > { %v1230_v49 = vadd.f32 %v1210_v51, %v1145_v2 }
 0x197   : > { %v1242_v0 = vadd.f32 %v2550_v16, %v1230_v49 }
 0x199   : > { %1250 = vst.msk [vmem:[%s2554_s18] sm:$0xff] %vm463_vm1, %v1242_v0 }
 0x19a   : > { %v1127_v27 = vpop.f32.mrf.mxu2  ;;  %v1212_v55 = vpop.f32.mrf.mxu3 }
 0x19b   : > { %v1146_v48 = vadd.f32 %v1127_v27, %v1051_v20 }
 0x19d   : > { %v1231_v53 = vadd.f32 %v1212_v55, %v1146_v48 }
 0x19f   : > { %v1243_v12 = vadd.f32 %v2550_v16, %v1231_v53 }
 0x1a1   : > { %1251 = vst.msk [vmem:[%s2554_s18 + $0x8] sm:$0xff] %vm463_vm1, %v1243_v12 }
 0x1b3   : > { %v1000_v50 = vpop.f32.mrf.mxu0  ;;  %v1053_v59 = vpop.f32.mrf.mxu1 }
 0x1b4   : > { %v1054_v7 = vadd.f32 %v1053_v59, %v1000_v50 }
 0x1ba   : > { %v1130_v46 = vpop.f32.mrf.mxu2  ;;  %v1215_v26 = vpop.f32.mrf.mxu3 }
 0x1bb   : > { %v1147_v40 = vadd.f32 %v1130_v46, %v1054_v7  ;;  %v1002_v8 = vpop.f32.mrf.mxu0  ;;  %v1055_v39 = vpop.f32.mrf.mxu1 }
 0x1bc   : > { %v1056_v45 = vadd.f32 %v1055_v39, %v1002_v8 }
 0x1bd   : > { %v1232_v42 = vadd.f32 %v1215_v26, %v1147_v40 }
 0x1bf   : > { %v1244_v54 = vadd.f32 %v2550_v16, %v1232_v42 }
 0x1c1   : > { %1252 = vst.msk [vmem:[%s2554_s18 + $0x10] sm:$0xff] %vm463_vm1, %v1244_v54 }
 0x1c2   : > { %v1132_v52 = vpop.f32.mrf.mxu2  ;;  %v1217_v9 = vpop.f32.mrf.mxu3 }
 0x1c3   : > { %v1148_v63 = vadd.f32 %v1132_v52, %v1056_v45 }
 0x1c5   : > { %v1233_v1 = vadd.f32 %v1217_v9, %v1148_v63 }
 0x1c7   : > { %v1245_v62 = vadd.f32 %v2550_v16, %v1233_v1 }
 0x1c9   : > { %1253 = vst.msk [vmem:[%s2554_s18 + $0x18] sm:$0xff] %vm463_vm1, %v1245_v62 }
 0x1dd   : > { %v1005_v17 = vpop.f32.mrf.mxu0  ;;  %v1058_v10 = vpop.f32.mrf.mxu1 }
 0x1de   : > { %v1059_v4 = vadd.f32 %v1058_v10, %v1005_v17 }
 0x1e4   : > { %v1135_v5 = vpop.f32.mrf.mxu2  ;;  %v1220_v15 = vpop.f32.mrf.mxu3 }
 0x1e5   : > { %v1149_v13 = vadd.f32 %v1135_v5, %v1059_v4  ;;  %v1007_v22 = vpop.f32.mrf.mxu0  ;;  %v1060_v29 = vpop.f32.mrf.mxu1 }
 0x1e6   : > { %v1061_v33 = vadd.f32 %v1060_v29, %v1007_v22 }
 0x1e7   : > { %v1234_v31 = vadd.f32 %v1220_v15, %v1149_v13 }
 0x1e9   : > { %v1246_v19 = vadd.f32 %v2550_v16, %v1234_v31 }
 0x1eb   : > { %1254 = vst.msk [vmem:[%s2554_s18 + $0x20] sm:$0xff] %vm463_vm1, %v1246_v19 }
 0x1ec   : > { %v1137_v25 = vpop.f32.mrf.mxu2  ;;  %v1222_v32 = vpop.f32.mrf.mxu3 }
 0x1ed   : > { %v1150_v24 = vadd.f32 %v1137_v25, %v1061_v33 }
 0x1ef   : > { %v1235_v21 = vadd.f32 %v1222_v32, %v1150_v24 }
 0x1f1   : > { %v1247_v58 = vadd.f32 %v2550_v16, %v1235_v21 }
 0x1f3   : > { %1255 = vst.msk [vmem:[%s2554_s18 + $0x28] sm:$0xff] %vm463_vm1, %v1247_v58 }
 0x20b   : > { %v1010_v36 = vpop.f32.mrf.mxu0  ;;  %v1063_v35 = vpop.f32.mrf.mxu1 }
 0x20c   : > { %v1064_v47 = vadd.f32 %v1063_v35, %v1010_v36 }
 0x212   : > { %v1140_v61 = vpop.f32.mrf.mxu2  ;;  %v1225_v37 = vpop.f32.mrf.mxu3 }
 0x213   : > { %v1151_v44 = vadd.f32 %v1140_v61, %v1064_v47  ;;  %v1012_v60 = vpop.f32.mrf.mxu0  ;;  %v1065_v34 = vpop.f32.mrf.mxu1 }
 0x214   : > { %v1066_v23 = vadd.f32 %v1065_v34, %v1012_v60 }
 0x215   : > { %v1236_v3 = vadd.f32 %v1225_v37, %v1151_v44 }
 0x217   : > { %v1248_v14 = vadd.f32 %v2550_v16, %v1236_v3 }
 0x219   : > { %1256 = vst.msk [vmem:[%s2554_s18 + $0x30] sm:$0xff] %vm463_vm1, %v1248_v14 }
 0x21a   : > { %v1142_v38 = vpop.f32.mrf.mxu2  ;;  %v1227_v43 = vpop.f32.mrf.mxu3 }
 0x21b   : > { %v1152_v57 = vadd.f32 %v1142_v38, %v1066_v23 }
 0x21d   : > { %v1237_v30 = vadd.f32 %v1227_v43, %v1152_v57 }
 0x21f   : > { %v1249_v18 = vadd.f32 %v2550_v16, %v1237_v30 }
 0x221   : > { %1257 = vst.msk [vmem:[%s2554_s18 + $0x38] sm:$0xff] %vm463_vm1, %v1249_v18 }
 0x222   : > { %1846 = shalt.err (!%p1843_p0)
}
 0x223   : > { %s1938_s0 = smov 128   ;;  %s1939_s21 = smov 8  }
 0x224   : > { %1552 = dma.vmem_to_hbm [thread:$0]  (%p2046_p9), %s1274_s25, 1024, %s1276_s23, %s1259_s17, %s1938_s0, %s1938_s0, %s1939_s21  }
 0x225 PF: > { %s2664_s30 = sld [smem:[#allocation17_spill]]  ;;  %p1578_p1 = scmp.ge.s32.totalorder %s1929_s28, 2 }
 0x227   : > { %p1572_p2 = pnand %p1578_p1, %p2053_p13 }
 0x229   : > { %p1573_p4 = pneg %p1572_p2 }
 0x22b   : > { %s1290_s19 = sand.u32 1, %s2664_s30  }
 0x22c   : > { %s1291_s8 = scalar_lea.sflag [#allocation4], %s1290_s19 }
 0x22d   : > { %1896 = dma.done.wait (%p1573_p4), %s1291_s8, 1024  }
 0x22e   : > { %1898 = vsyncadd (%p1573_p4), %s1291_s8, 4294966272  ;;  %s28_s28 = sadd.s32 1, %s1929_s28   ;;  %s2666_s18 = sld [smem:[#allocation18_spill]] }
 0x22f   : > { %p25_p5 = scmp.ge.s32.totalorder %s28_s28, 12   ;;  %s2667_s23 = sld [smem:[#allocation25_spill]] }
 0x230   : > { %s2668_s24 = sld [smem:[#allocation19_spill]]  ;;  %s2672_s21 = smov %s1905_s22 }
 0x231   : > { %s2669_s25 = sld [smem:[#allocation20_spill]]  ;;  %27 = sbr.rel (!%p25_p5) target bundleno = 15 (0xf), region = 130 }
 0x232   : > { %s2670_s26 = sld [smem:[#allocation21_spill]] }
 0x233   : > { %s2671_s27 = sld [smem:[#allocation22_spill]] }
 0x234   : > { %s2673_s22 = smov %s2666_s18 }
 0x236   :  { %1297 = vsyncpa [#allocation3], 1 }
 0x237   :  { %1299 = vsyncpa [#allocation3 + $0x1], 1 }
 0x238   :  { %1300 = vsyncpa [#allocation6], 1 }
 0x239   :  { %1302 = vsyncpa [#allocation6 + $0x1], 1 }
 0x23a   :  { %1303 = vsyncpa [#allocation9], 1 }
 0x23b   :  { %1305 = vsyncpa [#allocation9 + $0x1], 1 }
 0x23c   :  { %1306 = vsyncpa [#allocation4], 1 }
 0x23d   :  { %1308 = vsyncpa [#allocation4 + $0x1], 1 }

</bundles_post_ra>
